<compile_context>
chip_gen: v6e
topology: v6e:2x2x1
jax: 0.10.0
libtpu: 0.0.40
codegen_flags: <defaults>
</compile_context>

<pallas_src>
import functools

import jax
import jax.numpy as jnp
from jax.experimental import pallas as pl

D_MODEL = 32
NHEAD = 4
DIM_FF = 64
T_LEN = 8     # target sequence length
S_LEN = 16    # memory (source) sequence length
BATCH = 2


# ----------------------------- fused Pallas kernel ------------------------------

def _decoder_layer_kernel(tgt_ref, qpos_ref, mem_ref, pos_ref, w_ref, b_ref, o_ref,
                          *, B, H, F):
    f32 = jnp.float32
    bf16 = jnp.bfloat16
    D = o_ref.shape[-1]
    hd = D // H
    inv_d = 1.0 / float(D)

    # Activations: rows are time-major (row = t*B + b), a free reshape of the native (T, B, D).
    tgt = tgt_ref[...].astype(f32)     # (B*T, D)
    qpos = qpos_ref[...].astype(f32)   # (B*T, D)
    mem = mem_ref[...].astype(f32)     # (B*S, D)
    pos = pos_ref[...].astype(f32)     # (B*S, D)

    wts = w_ref[...]                   # (320, 128) bf16 weight slab
    bia = b_ref[...].astype(f32)       # (16, 128)  f32 bias / LayerNorm slab

    # Static slab offsets: every slice starts at lane 0 and at a 32-row sublane boundary.
    sa_qk_w = wts[0 * D:1 * D, :2 * D]     # (D, 2D)  q columns pre-scaled by 1/sqrt(hd)
    sa_v_w = wts[1 * D:2 * D, :D]
    sa_out_w = wts[2 * D:3 * D, :D]
    ca_q_w = wts[3 * D:4 * D, :D]          # pre-scaled
    ca_k_w = wts[4 * D:5 * D, :D]
    ca_v_w = wts[5 * D:6 * D, :D]
    ca_o_w = wts[6 * D:7 * D, :D]
    ff1_w = wts[7 * D:8 * D, :F]
    ff2_w = wts[8 * D:8 * D + F, :D]

    sa_qk_b = bia[0:1, :2 * D]
    sa_v_b = bia[1:2, :D]
    sa_out_b = bia[2:3, :D]
    ca_q_b = bia[3:4, :D]
    ca_k_b = bia[4:5, :D]
    ca_v_b = bia[5:6, :D]
    ca_o_b = bia[6:7, :D]
    ff1_b = bia[7:8, :F]
    ff2_b = bia[8:9, :D]

    def layer_norm(z, g_row, b_row):
        g = bia[g_row:g_row + 1, :D]
        beta = bia[b_row:b_row + 1, :D]
        mean = jnp.sum(z, axis=-1, keepdims=True) * inv_d
        zc = z - mean
        var = jnp.sum(zc * zc, axis=-1, keepdims=True) * inv_d
        return zc * jax.lax.rsqrt(var + 1e-5) * g + beta          # eps=1e-5 (PyTorch default)

    def proj(x, wgt, bias):
        # bf16 MXU operands, f32 accumulation, f32 bias add.
        return jnp.dot(x.astype(bf16), wgt, preferred_element_type=f32) + bias

    def attention(qT, kT, vT, w_out, b_out):
        """qT: (D, Nq), kT/vT: (D, Nk) bf16, feature-major so head slices are free sublanes."""
        nq = qT.shape[1]
        nk = kT.shape[1]
        # Batch mask: rows are time-major (row = t*B + b) -> same batch iff row % B matches.
        ki = jax.lax.broadcasted_iota(jnp.int32, (nk, nq), 0)
        qi = jax.lax.broadcasted_iota(jnp.int32, (nk, nq), 1)
        same_batch = (ki % B) == (qi % B)

        ctxT_heads = []
        for h in range(H):                                        # static unroll, H = 4
            lo = h * hd
            # S_h^T = K_h @ Q_h^T, contracting the hd feature rows (scale folded into Wq).
            sT = jax.lax.dot_general(kT[lo:lo + hd, :], qT[lo:lo + hd, :],
                                     (((0,), (0,)), ((), ())),
                                     preferred_element_type=f32)  # (Nk, Nq)
            sT = jnp.where(same_batch, sT, -1e30)
            sT = sT - jnp.max(sT, axis=0, keepdims=True)
            pT = jnp.exp(sT)
            denom = jnp.sum(pT, axis=0, keepdims=True)            # (1, Nq)
            pT = pT * pl.reciprocal(denom, approx=False)          # exact softmax
            # ctx_h^T = V_h^T @ P_h^T
            ctxT_heads.append(
                jax.lax.dot_general(vT[lo:lo + hd, :], pT.astype(bf16),
                                    (((1,), (0,)), ((), ())),
                                    preferred_element_type=f32))  # (hd, Nq)
        ctxT = jnp.concatenate(ctxT_heads, axis=0).astype(bf16)   # (D, Nq)
        # Head-merge fused into ONE K=D output projection: out = ctx @ W_out + b_out.
        out = jax.lax.dot_general(ctxT, w_out, (((0,), (0,)), ((), ())),
                                  preferred_element_type=f32)     # (Nq, D)
        return out + b_out

    # ---------------- self attention (q = k = tgt + query_pos, value = tgt) ----------------
    qk = proj(tgt + qpos, sa_qk_w, sa_qk_b)               # (B*T, 2D), one wide matmul
    qkT = qk.T.astype(bf16)                               # (2D, B*T)
    v_saT = proj(tgt, sa_v_w, sa_v_b).T.astype(bf16)      # (D, B*T)
    sa = attention(qkT[:D, :], qkT[D:, :], v_saT, sa_out_w, sa_out_b)
    x = layer_norm(tgt + sa, 9, 10)

    # -------- cross attention (MoChA 'scaled_dot' approximated as plain scaled-dot MHA) --------
    q_caT = proj(x + qpos, ca_q_w, ca_q_b).T.astype(bf16)      # (D, B*T)
    k_caT = proj(mem + pos, ca_k_w, ca_k_b).T.astype(bf16)     # (D, B*S)
    v_caT = proj(mem, ca_v_w, ca_v_b).T.astype(bf16)           # (D, B*S)
    ca = attention(q_caT, k_caT, v_caT, ca_o_w, ca_o_b)
    x = layer_norm(x + ca, 11, 12)

    # ---------------- feed-forward (relu) ----------------
    h1 = jnp.maximum(proj(x, ff1_w, ff1_b), 0.0)
    ff = proj(h1, ff2_w, ff2_b)
    x = layer_norm(x + ff, 13, 14)

    o_ref[...] = x.astype(o_ref.dtype)


# ------------------------------ packing + JAX wrapper ----------------------------------

def pack_params(params):
    """One-time packing of all weights/biases into two 128-lane slabs (amortized across calls).

    Weight slab (bf16, 320 x 128), every entry starting at lane 0:
        rows [0,32)    sa_qk_w (D,2D)  q cols pre-scaled     rows [160,192) ca_v_w (D,D)
        rows [32,64)   sa_v_w  (D,D)                          rows [192,224) ca_o_w (D,D)
        rows [64,96)   sa_out_w(D,D)                          rows [224,256) ff1_w  (D,F)
        rows [96,128)  ca_q_w  (D,D)  pre-scaled              rows [256,320) ff2_w  (F,D)
        rows [128,160) ca_k_w  (D,D)
    Bias/LN slab (f32, 16 x 128): one row per bias / LN parameter (see kernel row indices).
    """
    D, H = D_MODEL, NHEAD
    scale = 1.0 / float(D // H) ** 0.5

    sa_in_w = params['sa_in_w']                       # (D, 3D) packed q|k|v
    sa_in_b = params['sa_in_b']                       # (3D,)
    sa_qk_w = jnp.concatenate([sa_in_w[:, :D] * scale, sa_in_w[:, D:2 * D]], axis=1)
    sa_qk_b = jnp.concatenate([sa_in_b[:D] * scale, sa_in_b[D:2 * D]])

    def pad_w(w):
        return jnp.pad(w, ((0, 0), (0, 128 - w.shape[1])))

    w_slab = jnp.concatenate([
        pad_w(sa_qk_w), pad_w(sa_in_w[:, 2 * D:]),
        pad_w(params['sa_out_w']),
        pad_w(params['ca_q_w'] * scale), pad_w(params['ca_k_w']), pad_w(params['ca_v_w']),
        pad_w(params['ca_o_w']),
        pad_w(params['ff1_w']), pad_w(params['ff2_w']),
    ], axis=0).astype(jnp.bfloat16)

    def row(v):
        return jnp.pad(v, (0, 128 - v.shape[0]))[None, :]

    b_slab = jnp.concatenate([
        row(sa_qk_b), row(sa_in_b[2 * D:]),
        row(params['sa_out_b']),
        row(params['ca_q_b'] * scale), row(params['ca_k_b']), row(params['ca_v_b']),
        row(params['ca_o_b']),
        row(params['ff1_b']), row(params['ff2_b']),
        row(params['ln1_g']), row(params['ln1_b']),
        row(params['ln2_g']), row(params['ln2_b']),
        row(params['ln3_g']), row(params['ln3_b']),
        jnp.zeros((1, 128), jnp.float32),
    ], axis=0).astype(jnp.float32)
    return w_slab, b_slab


def transformer_decoder_layer_mma(tgt, memory, w_slab, b_slab, pos=None, query_pos=None):
    """forward_post: self-attn -> add&norm1 -> cross-attn -> add&norm2 -> FFN -> add&norm3."""
    T, B, D = tgt.shape
    S = memory.shape[0]
    if query_pos is None:
        query_pos = jnp.zeros_like(tgt)
    if pos is None:
        pos = jnp.zeros_like(memory)

    kernel = functools.partial(_decoder_layer_kernel, B=B, H=NHEAD, F=DIM_FF)
    out = pl.pallas_call(
        kernel,
        out_shape=jax.ShapeDtypeStruct((T * B, D), tgt.dtype),
    )(
        # (T,B,D) -> (T*B,D) is a contiguous (free) reshape: no wrapper transposes/dispatches.
        tgt.reshape(T * B, D), query_pos.reshape(T * B, D),
        memory.reshape(S * B, D), pos.reshape(S * B, D),
        w_slab, b_slab,
    )
    return out.reshape(T, B, D)


# ------------------------------ params & reference ----------------------------------

def init_params(key):
    D, F = D_MODEL, DIM_FF

    def nrm(k, shape, scale=0.05):
        return jax.random.normal(k, shape, jnp.float32) * scale

    ks = jax.random.split(key, 22)
    p = {}
    # nn.MultiheadAttention: in_proj (D, 3D) stored input-major, out_proj (D, D)
    p['sa_in_w'] = nrm(ks[0], (D, 3 * D)); p['sa_in_b'] = nrm(ks[1], (3 * D,))
    p['sa_out_w'] = nrm(ks[2], (D, D));    p['sa_out_b'] = nrm(ks[3], (D,))
    # MoChA (approximated): per-projection q/k/v/out linears, d_model -> d_model
    p['ca_q_w'] = nrm(ks[4], (D, D)); p['ca_q_b'] = nrm(ks[5], (D,))
    p['ca_k_w'] = nrm(ks[6], (D, D)); p['ca_k_b'] = nrm(ks[7], (D,))
    p['ca_v_w'] = nrm(ks[8], (D, D)); p['ca_v_b'] = nrm(ks[9], (D,))
    p['ca_o_w'] = nrm(ks[10], (D, D)); p['ca_o_b'] = nrm(ks[11], (D,))
    # FFN
    p['ff1_w'] = nrm(ks[12], (D, F)); p['ff1_b'] = nrm(ks[13], (F,))
    p['ff2_w'] = nrm(ks[14], (F, D)); p['ff2_b'] = nrm(ks[15], (D,))
    # LayerNorms (non-trivial gains/biases so slab offsets are exercised)
    p['ln1_g'] = 1.0 + nrm(ks[16], (D,)); p['ln1_b'] = nrm(ks[17], (D,))
    p['ln2_g'] = 1.0 + nrm(ks[18], (D,)); p['ln2_b'] = nrm(ks[19], (D,))
    p['ln3_g'] = 1.0 + nrm(ks[20], (D,)); p['ln3_b'] = nrm(ks[21], (D,))
    return p


def _reference(tgt, memory, params, pos, query_pos):
    """Pure-JAX (non-Pallas) f32 reference of the same forward_post math."""
    T, B, D = tgt.shape
    H = NHEAD
    hd = D // H
    scale = float(hd) ** -0.5

    def mha(q, k, v, w_out, b_out):
        Lq, Lk = q.shape[0], k.shape[0]
        qh = q.reshape(Lq, B, H, hd)
        kh = k.reshape(Lk, B, H, hd)
        vh = v.reshape(Lk, B, H, hd)
        s = jnp.einsum('qbhd,kbhd->bhqk', qh, kh) * scale
        p = jax.nn.softmax(s, axis=-1)
        ctx = jnp.einsum('bhqk,kbhd->qbhd', p, vh).reshape(Lq, B, D)
        return ctx @ w_out + b_out

    def ln(z, g, b):
        m = z.mean(-1, keepdims=True)
        v = ((z - m) ** 2).mean(-1, keepdims=True)
        return (z - m) * jax.lax.rsqrt(v + 1e-5) * g + b

    wq, wk, wv = jnp.split(params['sa_in_w'], 3, axis=1)
    bq, bk, bv = jnp.split(params['sa_in_b'], 3)
    qk_in = tgt + query_pos
    q = qk_in @ wq + bq
    k = qk_in @ wk + bk
    v = tgt @ wv + bv
    sa = mha(q, k, v, params['sa_out_w'], params['sa_out_b'])
    x = ln(tgt + sa, params['ln1_g'], params['ln1_b'])

    qc = (x + query_pos) @ params['ca_q_w'] + params['ca_q_b']
    kc = (memory + pos) @ params['ca_k_w'] + params['ca_k_b']
    vc = memory @ params['ca_v_w'] + params['ca_v_b']
    ca = mha(qc, kc, vc, params['ca_o_w'], params['ca_o_b'])
    x = ln(x + ca, params['ln2_g'], params['ln2_b'])

    h = jnp.maximum(x @ params['ff1_w'] + params['ff1_b'], 0.0)
    ff = h @ params['ff2_w'] + params['ff2_b']
    return ln(x + ff, params['ln3_g'], params['ln3_b'])


if __name__ == "__main__":
    key = jax.random.PRNGKey(0)
    kp, kt, km, kqp, kpos = jax.random.split(key, 5)
    params = init_params(kp)
    w_slab, b_slab = pack_params(params)   # one-time packing, amortized across calls

    tgt = jax.random.normal(kt, (T_LEN, BATCH, D_MODEL), jnp.float32)
    memory = jax.random.normal(km, (S_LEN, BATCH, D_MODEL), jnp.float32)
    query_pos = 0.1 * jax.random.normal(kqp, (T_LEN, BATCH, D_MODEL), jnp.float32)
    pos = 0.1 * jax.random.normal(kpos, (S_LEN, BATCH, D_MODEL), jnp.float32)

    fn = jax.jit(transformer_decoder_layer_mma)
    out = fn(tgt, memory, w_slab, b_slab, pos, query_pos)
    jax.block_until_ready(out)

    assert out.shape == (T_LEN, BATCH, D_MODEL)
    assert bool(jnp.all(jnp.isfinite(out)))

    ref = _reference(tgt, memory, params, pos, query_pos)
    max_err = float(jnp.max(jnp.abs(out - ref)))
    # tolerance accounts for bf16 MXU operands (f32 accumulation) vs the f32 reference
    assert max_err < 5e-2, f"mismatch vs pure-JAX reference: {max_err}"

    print("KERNEL_OK")
</pallas_src>

<mosaic_0001>
module attributes {stable_mosaic.version = 11 : i64} {
  func.func @_decoder_layer_kernel(%arg0: memref<16x32xf32, #tpu.memory_space<vmem>>, %arg1: memref<16x32xf32, #tpu.memory_space<vmem>>, %arg2: memref<32x32xf32, #tpu.memory_space<vmem>>, %arg3: memref<32x32xf32, #tpu.memory_space<vmem>>, %arg4: memref<320x128xbf16, #tpu.memory_space<vmem>>, %arg5: memref<16x128xf32, #tpu.memory_space<vmem>>, %arg6: memref<16x32xf32, #tpu.memory_space<vmem>>) attributes {dimension_semantics = [], scalar_prefetch = 0 : i64, scratch_operands = 0 : i64, tpu.core_type = #tpu.core_type<tc>} {
    %c0 = arith.constant 0 : index
    %c0_0 = arith.constant 0 : index
    %0 = vector.load %arg0[%c0, %c0_0] : memref<16x32xf32, #tpu.memory_space<vmem>>, vector<16x32xf32>
    %c0_1 = arith.constant 0 : index
    %c0_2 = arith.constant 0 : index
    %1 = vector.load %arg1[%c0_1, %c0_2] : memref<16x32xf32, #tpu.memory_space<vmem>>, vector<16x32xf32>
    %c0_3 = arith.constant 0 : index
    %c0_4 = arith.constant 0 : index
    %2 = vector.load %arg2[%c0_3, %c0_4] : memref<32x32xf32, #tpu.memory_space<vmem>>, vector<32x32xf32>
    %c0_5 = arith.constant 0 : index
    %c0_6 = arith.constant 0 : index
    %3 = vector.load %arg3[%c0_5, %c0_6] : memref<32x32xf32, #tpu.memory_space<vmem>>, vector<32x32xf32>
    %c0_7 = arith.constant 0 : index
    %c0_8 = arith.constant 0 : index
    %4 = vector.load %arg4[%c0_7, %c0_8] : memref<320x128xbf16, #tpu.memory_space<vmem>>, vector<320x128xbf16>
    %c0_9 = arith.constant 0 : index
    %c0_10 = arith.constant 0 : index
    %5 = vector.load %arg5[%c0_9, %c0_10] : memref<16x128xf32, #tpu.memory_space<vmem>>, vector<16x128xf32>
    %6 = vector.extract_strided_slice %4 {offsets = [0, 0], sizes = [32, 64], strides = [1, 1]} : vector<320x128xbf16> to vector<32x64xbf16>
    %7 = vector.extract_strided_slice %4 {offsets = [32, 0], sizes = [32, 32], strides = [1, 1]} : vector<320x128xbf16> to vector<32x32xbf16>
    %8 = vector.extract_strided_slice %4 {offsets = [64, 0], sizes = [32, 32], strides = [1, 1]} : vector<320x128xbf16> to vector<32x32xbf16>
    %9 = vector.extract_strided_slice %4 {offsets = [96, 0], sizes = [32, 32], strides = [1, 1]} : vector<320x128xbf16> to vector<32x32xbf16>
    %10 = vector.extract_strided_slice %4 {offsets = [128, 0], sizes = [32, 32], strides = [1, 1]} : vector<320x128xbf16> to vector<32x32xbf16>
    %11 = vector.extract_strided_slice %4 {offsets = [160, 0], sizes = [32, 32], strides = [1, 1]} : vector<320x128xbf16> to vector<32x32xbf16>
    %12 = vector.extract_strided_slice %4 {offsets = [192, 0], sizes = [32, 32], strides = [1, 1]} : vector<320x128xbf16> to vector<32x32xbf16>
    %13 = vector.extract_strided_slice %4 {offsets = [224, 0], sizes = [32, 64], strides = [1, 1]} : vector<320x128xbf16> to vector<32x64xbf16>
    %14 = vector.extract_strided_slice %4 {offsets = [256, 0], sizes = [64, 32], strides = [1, 1]} : vector<320x128xbf16> to vector<64x32xbf16>
    %15 = vector.extract_strided_slice %5 {offsets = [0, 0], sizes = [1, 64], strides = [1, 1]} : vector<16x128xf32> to vector<1x64xf32>
    %16 = vector.extract_strided_slice %5 {offsets = [1, 0], sizes = [1, 32], strides = [1, 1]} : vector<16x128xf32> to vector<1x32xf32>
    %17 = vector.extract_strided_slice %5 {offsets = [2, 0], sizes = [1, 32], strides = [1, 1]} : vector<16x128xf32> to vector<1x32xf32>
    %18 = vector.extract_strided_slice %5 {offsets = [3, 0], sizes = [1, 32], strides = [1, 1]} : vector<16x128xf32> to vector<1x32xf32>
    %19 = vector.extract_strided_slice %5 {offsets = [4, 0], sizes = [1, 32], strides = [1, 1]} : vector<16x128xf32> to vector<1x32xf32>
    %20 = vector.extract_strided_slice %5 {offsets = [5, 0], sizes = [1, 32], strides = [1, 1]} : vector<16x128xf32> to vector<1x32xf32>
    %21 = vector.extract_strided_slice %5 {offsets = [6, 0], sizes = [1, 32], strides = [1, 1]} : vector<16x128xf32> to vector<1x32xf32>
    %22 = vector.extract_strided_slice %5 {offsets = [7, 0], sizes = [1, 64], strides = [1, 1]} : vector<16x128xf32> to vector<1x64xf32>
    %23 = vector.extract_strided_slice %5 {offsets = [8, 0], sizes = [1, 32], strides = [1, 1]} : vector<16x128xf32> to vector<1x32xf32>
    %24 = arith.addf %0, %1 : vector<16x32xf32>
    %25 = arith.truncf %24 : vector<16x32xf32> to vector<16x32xbf16>
    %cst = arith.constant dense<0.000000e+00> : vector<16x64xf32>
    %26 = tpu.matmul %25, %6, %cst {dimension_numbers = #tpu.dot_dimension_numbers<[1], [0], [0], [1], [0, 0, 1, 1], [], []>} : vector<16x32xbf16>, vector<32x64xbf16>, vector<16x64xf32> -> vector<16x64xf32>
    %27 = vector.broadcast %15 : vector<1x64xf32> to vector<16x64xf32>
    %28 = arith.addf %26, %27 : vector<16x64xf32>
    %29 = tpu.transpose %28, [1, 0] : vector<16x64xf32> -> vector<64x16xf32>
    %30 = arith.truncf %29 : vector<64x16xf32> to vector<64x16xbf16>
    %31 = arith.truncf %0 : vector<16x32xf32> to vector<16x32xbf16>
    %cst_11 = arith.constant dense<0.000000e+00> : vector<16x32xf32>
    %32 = tpu.matmul %31, %7, %cst_11 {dimension_numbers = #tpu.dot_dimension_numbers<[1], [0], [0], [1], [0, 0, 1, 1], [], []>} : vector<16x32xbf16>, vector<32x32xbf16>, vector<16x32xf32> -> vector<16x32xf32>
    %33 = vector.broadcast %16 : vector<1x32xf32> to vector<16x32xf32>
    %34 = arith.addf %32, %33 : vector<16x32xf32>
    %35 = tpu.transpose %34, [1, 0] : vector<16x32xf32> -> vector<32x16xf32>
    %36 = arith.truncf %35 : vector<32x16xf32> to vector<32x16xbf16>
    %37 = vector.extract_strided_slice %30 {offsets = [0, 0], sizes = [32, 16], strides = [1, 1]} : vector<64x16xbf16> to vector<32x16xbf16>
    %38 = vector.extract_strided_slice %30 {offsets = [32, 0], sizes = [32, 16], strides = [1, 1]} : vector<64x16xbf16> to vector<32x16xbf16>
    %39 = tpu.iota {dimensions = array<i32: 0>} : vector<16x16xi32>
    %40 = tpu.iota {dimensions = array<i32: 1>} : vector<16x16xi32>
    %c2_i32 = arith.constant 2 : i32
    %c0_i32 = arith.constant 0 : i32
    %41 = arith.cmpi eq, %c2_i32, %c0_i32 : i32
    %c1_i32 = arith.constant 1 : i32
    %42 = arith.select %41, %c1_i32, %c2_i32 : i32
    %43 = vector.broadcast %42 : i32 to vector<16x16xi32>
    %44 = arith.remsi %39, %43 : vector<16x16xi32>
    %c0_i32_12 = arith.constant 0 : i32
    %45 = vector.broadcast %c0_i32_12 : i32 to vector<16x16xi32>
    %46 = arith.cmpi ne, %44, %45 : vector<16x16xi32>
    %c0_i32_13 = arith.constant 0 : i32
    %47 = vector.broadcast %c0_i32_13 : i32 to vector<16x16xi32>
    %48 = arith.cmpi slt, %44, %47 : vector<16x16xi32>
    %c0_i32_14 = arith.constant 0 : i32
    %49 = arith.cmpi slt, %42, %c0_i32_14 : i32
    %50 = vector.broadcast %49 : i1 to vector<16x16xi1>
    %51 = vector.broadcast %50 : vector<16x16xi1> to vector<16x16xi1>
    %52 = arith.xori %48, %51 : vector<16x16xi1>
    %53 = arith.andi %52, %46 : vector<16x16xi1>
    %54 = vector.broadcast %42 : i32 to vector<16x16xi32>
    %55 = arith.addi %44, %54 : vector<16x16xi32>
    %56 = arith.select %53, %55, %44 : vector<16x16xi1>, vector<16x16xi32>
    %c2_i32_15 = arith.constant 2 : i32
    %c0_i32_16 = arith.constant 0 : i32
    %57 = arith.cmpi eq, %c2_i32_15, %c0_i32_16 : i32
    %c1_i32_17 = arith.constant 1 : i32
    %58 = arith.select %57, %c1_i32_17, %c2_i32_15 : i32
    %59 = vector.broadcast %58 : i32 to vector<16x16xi32>
    %60 = arith.remsi %40, %59 : vector<16x16xi32>
    %c0_i32_18 = arith.constant 0 : i32
    %61 = vector.broadcast %c0_i32_18 : i32 to vector<16x16xi32>
    %62 = arith.cmpi ne, %60, %61 : vector<16x16xi32>
    %c0_i32_19 = arith.constant 0 : i32
    %63 = vector.broadcast %c0_i32_19 : i32 to vector<16x16xi32>
    %64 = arith.cmpi slt, %60, %63 : vector<16x16xi32>
    %c0_i32_20 = arith.constant 0 : i32
    %65 = arith.cmpi slt, %58, %c0_i32_20 : i32
    %66 = vector.broadcast %65 : i1 to vector<16x16xi1>
    %67 = vector.broadcast %66 : vector<16x16xi1> to vector<16x16xi1>
    %68 = arith.xori %64, %67 : vector<16x16xi1>
    %69 = arith.andi %68, %62 : vector<16x16xi1>
    %70 = vector.broadcast %58 : i32 to vector<16x16xi32>
    %71 = arith.addi %60, %70 : vector<16x16xi32>
    %72 = arith.select %69, %71, %60 : vector<16x16xi1>, vector<16x16xi32>
    %73 = arith.cmpi eq, %56, %72 : vector<16x16xi32>
    %74 = vector.extract_strided_slice %38 {offsets = [0, 0], sizes = [8, 16], strides = [1, 1]} : vector<32x16xbf16> to vector<8x16xbf16>
    %75 = vector.extract_strided_slice %37 {offsets = [0, 0], sizes = [8, 16], strides = [1, 1]} : vector<32x16xbf16> to vector<8x16xbf16>
    %cst_21 = arith.constant dense<0.000000e+00> : vector<16x16xf32>
    %76 = tpu.matmul %74, %75, %cst_21 {dimension_numbers = #tpu.dot_dimension_numbers<[0], [0], [1], [1], [0, 1, 1, 1], [], []>} : vector<8x16xbf16>, vector<8x16xbf16>, vector<16x16xf32> -> vector<16x16xf32>
    %cst_22 = arith.constant -1.000000e+30 : f32
    %77 = vector.broadcast %cst_22 : f32 to vector<16x16xf32>
    %78 = arith.select %73, %76, %77 : vector<16x16xi1>, vector<16x16xf32>
    %cst_23 = arith.constant dense<0xFF800000> : vector<16xf32>
    %79 = vector.multi_reduction <maximumf>, %78, %cst_23 [0] : vector<16x16xf32> to vector<16xf32>
    %80 = vector.shape_cast %79 : vector<16xf32> to vector<1x16xf32>
    %81 = vector.broadcast %80 : vector<1x16xf32> to vector<16x16xf32>
    %82 = arith.subf %78, %81 : vector<16x16xf32>
    %83 = math.exp %82 : vector<16x16xf32>
    %cst_24 = arith.constant dense<0.000000e+00> : vector<16xf32>
    %84 = vector.multi_reduction <add>, %83, %cst_24 [0] : vector<16x16xf32> to vector<16xf32>
    %85 = vector.shape_cast %84 : vector<16xf32> to vector<1x16xf32>
    %86 = tpu.reciprocal %85 : vector<1x16xf32> -> vector<1x16xf32>
    %87 = vector.broadcast %86 : vector<1x16xf32> to vector<16x16xf32>
    %88 = arith.mulf %83, %87 : vector<16x16xf32>
    %89 = vector.extract_strided_slice %36 {offsets = [0, 0], sizes = [8, 16], strides = [1, 1]} : vector<32x16xbf16> to vector<8x16xbf16>
    %90 = arith.truncf %88 : vector<16x16xf32> to vector<16x16xbf16>
    %cst_25 = arith.constant dense<0.000000e+00> : vector<8x16xf32>
    %91 = tpu.matmul %89, %90, %cst_25 {dimension_numbers = #tpu.dot_dimension_numbers<[1], [0], [0], [1], [0, 0, 1, 1], [], []>} : vector<8x16xbf16>, vector<16x16xbf16>, vector<8x16xf32> -> vector<8x16xf32>
    %92 = vector.extract_strided_slice %38 {offsets = [8, 0], sizes = [8, 16], strides = [1, 1]} : vector<32x16xbf16> to vector<8x16xbf16>
    %93 = vector.extract_strided_slice %37 {offsets = [8, 0], sizes = [8, 16], strides = [1, 1]} : vector<32x16xbf16> to vector<8x16xbf16>
    %cst_26 = arith.constant dense<0.000000e+00> : vector<16x16xf32>
    %94 = tpu.matmul %92, %93, %cst_26 {dimension_numbers = #tpu.dot_dimension_numbers<[0], [0], [1], [1], [0, 1, 1, 1], [], []>} : vector<8x16xbf16>, vector<8x16xbf16>, vector<16x16xf32> -> vector<16x16xf32>
    %cst_27 = arith.constant -1.000000e+30 : f32
    %95 = vector.broadcast %cst_27 : f32 to vector<16x16xf32>
    %96 = arith.select %73, %94, %95 : vector<16x16xi1>, vector<16x16xf32>
    %cst_28 = arith.constant dense<0xFF800000> : vector<16xf32>
    %97 = vector.multi_reduction <maximumf>, %96, %cst_28 [0] : vector<16x16xf32> to vector<16xf32>
    %98 = vector.shape_cast %97 : vector<16xf32> to vector<1x16xf32>
    %99 = vector.broadcast %98 : vector<1x16xf32> to vector<16x16xf32>
    %100 = arith.subf %96, %99 : vector<16x16xf32>
    %101 = math.exp %100 : vector<16x16xf32>
    %cst_29 = arith.constant dense<0.000000e+00> : vector<16xf32>
    %102 = vector.multi_reduction <add>, %101, %cst_29 [0] : vector<16x16xf32> to vector<16xf32>
    %103 = vector.shape_cast %102 : vector<16xf32> to vector<1x16xf32>
    %104 = tpu.reciprocal %103 : vector<1x16xf32> -> vector<1x16xf32>
    %105 = vector.broadcast %104 : vector<1x16xf32> to vector<16x16xf32>
    %106 = arith.mulf %101, %105 : vector<16x16xf32>
    %107 = vector.extract_strided_slice %36 {offsets = [8, 0], sizes = [8, 16], strides = [1, 1]} : vector<32x16xbf16> to vector<8x16xbf16>
    %108 = arith.truncf %106 : vector<16x16xf32> to vector<16x16xbf16>
    %cst_30 = arith.constant dense<0.000000e+00> : vector<8x16xf32>
    %109 = tpu.matmul %107, %108, %cst_30 {dimension_numbers = #tpu.dot_dimension_numbers<[1], [0], [0], [1], [0, 0, 1, 1], [], []>} : vector<8x16xbf16>, vector<16x16xbf16>, vector<8x16xf32> -> vector<8x16xf32>
    %110 = vector.extract_strided_slice %38 {offsets = [16, 0], sizes = [8, 16], strides = [1, 1]} : vector<32x16xbf16> to vector<8x16xbf16>
    %111 = vector.extract_strided_slice %37 {offsets = [16, 0], sizes = [8, 16], strides = [1, 1]} : vector<32x16xbf16> to vector<8x16xbf16>
    %cst_31 = arith.constant dense<0.000000e+00> : vector<16x16xf32>
    %112 = tpu.matmul %110, %111, %cst_31 {dimension_numbers = #tpu.dot_dimension_numbers<[0], [0], [1], [1], [0, 1, 1, 1], [], []>} : vector<8x16xbf16>, vector<8x16xbf16>, vector<16x16xf32> -> vector<16x16xf32>
    %cst_32 = arith.constant -1.000000e+30 : f32
    %113 = vector.broadcast %cst_32 : f32 to vector<16x16xf32>
    %114 = arith.select %73, %112, %113 : vector<16x16xi1>, vector<16x16xf32>
    %cst_33 = arith.constant dense<0xFF800000> : vector<16xf32>
    %115 = vector.multi_reduction <maximumf>, %114, %cst_33 [0] : vector<16x16xf32> to vector<16xf32>
    %116 = vector.shape_cast %115 : vector<16xf32> to vector<1x16xf32>
    %117 = vector.broadcast %116 : vector<1x16xf32> to vector<16x16xf32>
    %118 = arith.subf %114, %117 : vector<16x16xf32>
    %119 = math.exp %118 : vector<16x16xf32>
    %cst_34 = arith.constant dense<0.000000e+00> : vector<16xf32>
    %120 = vector.multi_reduction <add>, %119, %cst_34 [0] : vector<16x16xf32> to vector<16xf32>
    %121 = vector.shape_cast %120 : vector<16xf32> to vector<1x16xf32>
    %122 = tpu.reciprocal %121 : vector<1x16xf32> -> vector<1x16xf32>
    %123 = vector.broadcast %122 : vector<1x16xf32> to vector<16x16xf32>
    %124 = arith.mulf %119, %123 : vector<16x16xf32>
    %125 = vector.extract_strided_slice %36 {offsets = [16, 0], sizes = [8, 16], strides = [1, 1]} : vector<32x16xbf16> to vector<8x16xbf16>
    %126 = arith.truncf %124 : vector<16x16xf32> to vector<16x16xbf16>
    %cst_35 = arith.constant dense<0.000000e+00> : vector<8x16xf32>
    %127 = tpu.matmul %125, %126, %cst_35 {dimension_numbers = #tpu.dot_dimension_numbers<[1], [0], [0], [1], [0, 0, 1, 1], [], []>} : vector<8x16xbf16>, vector<16x16xbf16>, vector<8x16xf32> -> vector<8x16xf32>
    %128 = vector.extract_strided_slice %38 {offsets = [24, 0], sizes = [8, 16], strides = [1, 1]} : vector<32x16xbf16> to vector<8x16xbf16>
    %129 = vector.extract_strided_slice %37 {offsets = [24, 0], sizes = [8, 16], strides = [1, 1]} : vector<32x16xbf16> to vector<8x16xbf16>
    %cst_36 = arith.constant dense<0.000000e+00> : vector<16x16xf32>
    %130 = tpu.matmul %128, %129, %cst_36 {dimension_numbers = #tpu.dot_dimension_numbers<[0], [0], [1], [1], [0, 1, 1, 1], [], []>} : vector<8x16xbf16>, vector<8x16xbf16>, vector<16x16xf32> -> vector<16x16xf32>
    %cst_37 = arith.constant -1.000000e+30 : f32
    %131 = vector.broadcast %cst_37 : f32 to vector<16x16xf32>
    %132 = arith.select %73, %130, %131 : vector<16x16xi1>, vector<16x16xf32>
    %cst_38 = arith.constant dense<0xFF800000> : vector<16xf32>
    %133 = vector.multi_reduction <maximumf>, %132, %cst_38 [0] : vector<16x16xf32> to vector<16xf32>
    %134 = vector.shape_cast %133 : vector<16xf32> to vector<1x16xf32>
    %135 = vector.broadcast %134 : vector<1x16xf32> to vector<16x16xf32>
    %136 = arith.subf %132, %135 : vector<16x16xf32>
    %137 = math.exp %136 : vector<16x16xf32>
    %cst_39 = arith.constant dense<0.000000e+00> : vector<16xf32>
    %138 = vector.multi_reduction <add>, %137, %cst_39 [0] : vector<16x16xf32> to vector<16xf32>
    %139 = vector.shape_cast %138 : vector<16xf32> to vector<1x16xf32>
    %140 = tpu.reciprocal %139 : vector<1x16xf32> -> vector<1x16xf32>
    %141 = vector.broadcast %140 : vector<1x16xf32> to vector<16x16xf32>
    %142 = arith.mulf %137, %141 : vector<16x16xf32>
    %143 = vector.extract_strided_slice %36 {offsets = [24, 0], sizes = [8, 16], strides = [1, 1]} : vector<32x16xbf16> to vector<8x16xbf16>
    %144 = arith.truncf %142 : vector<16x16xf32> to vector<16x16xbf16>
    %cst_40 = arith.constant dense<0.000000e+00> : vector<8x16xf32>
    %145 = tpu.matmul %143, %144, %cst_40 {dimension_numbers = #tpu.dot_dimension_numbers<[1], [0], [0], [1], [0, 0, 1, 1], [], []>} : vector<8x16xbf16>, vector<16x16xbf16>, vector<8x16xf32> -> vector<8x16xf32>
    %146 = tpu.concatenate %91, %109, %127, %145 in 0 : vector<8x16xf32>, vector<8x16xf32>, vector<8x16xf32>, vector<8x16xf32> -> vector<32x16xf32>
    %147 = arith.truncf %146 : vector<32x16xf32> to vector<32x16xbf16>
    %cst_41 = arith.constant dense<0.000000e+00> : vector<16x32xf32>
    %148 = tpu.matmul %147, %8, %cst_41 {dimension_numbers = #tpu.dot_dimension_numbers<[0], [0], [1], [1], [0, 1, 1, 1], [], []>} : vector<32x16xbf16>, vector<32x32xbf16>, vector<16x32xf32> -> vector<16x32xf32>
    %149 = vector.broadcast %17 : vector<1x32xf32> to vector<16x32xf32>
    %150 = arith.addf %148, %149 : vector<16x32xf32>
    %151 = arith.addf %0, %150 : vector<16x32xf32>
    %152 = vector.extract_strided_slice %5 {offsets = [9, 0], sizes = [1, 32], strides = [1, 1]} : vector<16x128xf32> to vector<1x32xf32>
    %153 = vector.extract_strided_slice %5 {offsets = [10, 0], sizes = [1, 32], strides = [1, 1]} : vector<16x128xf32> to vector<1x32xf32>
    %cst_42 = arith.constant dense<0.000000e+00> : vector<16xf32>
    %154 = vector.multi_reduction <add>, %151, %cst_42 [1] : vector<16x32xf32> to vector<16xf32>
    %155 = vector.shape_cast %154 : vector<16xf32> to vector<16x1xf32>
    %cst_43 = arith.constant 3.125000e-02 : f32
    %156 = vector.broadcast %cst_43 : f32 to vector<16x1xf32>
    %157 = arith.mulf %155, %156 : vector<16x1xf32>
    %158 = vector.broadcast %157 : vector<16x1xf32> to vector<16x32xf32>
    %159 = arith.subf %151, %158 : vector<16x32xf32>
    %160 = arith.mulf %159, %159 : vector<16x32xf32>
    %cst_44 = arith.constant dense<0.000000e+00> : vector<16xf32>
    %161 = vector.multi_reduction <add>, %160, %cst_44 [1] : vector<16x32xf32> to vector<16xf32>
    %162 = vector.shape_cast %161 : vector<16xf32> to vector<16x1xf32>
    %cst_45 = arith.constant 3.125000e-02 : f32
    %163 = vector.broadcast %cst_45 : f32 to vector<16x1xf32>
    %164 = arith.mulf %162, %163 : vector<16x1xf32>
    %cst_46 = arith.constant 9.99999974E-6 : f32
    %165 = vector.broadcast %cst_46 : f32 to vector<16x1xf32>
    %166 = arith.addf %164, %165 : vector<16x1xf32>
    %167 = math.rsqrt %166 : vector<16x1xf32>
    %168 = vector.broadcast %167 : vector<16x1xf32> to vector<16x32xf32>
    %169 = arith.mulf %159, %168 : vector<16x32xf32>
    %170 = vector.broadcast %152 : vector<1x32xf32> to vector<16x32xf32>
    %171 = arith.mulf %169, %170 : vector<16x32xf32>
    %172 = vector.broadcast %153 : vector<1x32xf32> to vector<16x32xf32>
    %173 = arith.addf %171, %172 : vector<16x32xf32>
    %174 = arith.addf %173, %1 : vector<16x32xf32>
    %175 = arith.truncf %174 : vector<16x32xf32> to vector<16x32xbf16>
    %cst_47 = arith.constant dense<0.000000e+00> : vector<16x32xf32>
    %176 = tpu.matmul %175, %9, %cst_47 {dimension_numbers = #tpu.dot_dimension_numbers<[1], [0], [0], [1], [0, 0, 1, 1], [], []>} : vector<16x32xbf16>, vector<32x32xbf16>, vector<16x32xf32> -> vector<16x32xf32>
    %177 = vector.broadcast %18 : vector<1x32xf32> to vector<16x32xf32>
    %178 = arith.addf %176, %177 : vector<16x32xf32>
    %179 = tpu.transpose %178, [1, 0] : vector<16x32xf32> -> vector<32x16xf32>
    %180 = arith.truncf %179 : vector<32x16xf32> to vector<32x16xbf16>
    %181 = arith.addf %2, %3 : vector<32x32xf32>
    %182 = arith.truncf %181 : vector<32x32xf32> to vector<32x32xbf16>
    %cst_48 = arith.constant dense<0.000000e+00> : vector<32x32xf32>
    %183 = tpu.matmul %182, %10, %cst_48 {dimension_numbers = #tpu.dot_dimension_numbers<[1], [0], [0], [1], [0, 0, 1, 1], [], []>} : vector<32x32xbf16>, vector<32x32xbf16>, vector<32x32xf32> -> vector<32x32xf32>
    %184 = vector.broadcast %19 : vector<1x32xf32> to vector<32x32xf32>
    %185 = arith.addf %183, %184 : vector<32x32xf32>
    %186 = tpu.transpose %185, [1, 0] : vector<32x32xf32> -> vector<32x32xf32>
    %187 = arith.truncf %186 : vector<32x32xf32> to vector<32x32xbf16>
    %188 = arith.truncf %2 : vector<32x32xf32> to vector<32x32xbf16>
    %cst_49 = arith.constant dense<0.000000e+00> : vector<32x32xf32>
    %189 = tpu.matmul %188, %11, %cst_49 {dimension_numbers = #tpu.dot_dimension_numbers<[1], [0], [0], [1], [0, 0, 1, 1], [], []>} : vector<32x32xbf16>, vector<32x32xbf16>, vector<32x32xf32> -> vector<32x32xf32>
    %190 = vector.broadcast %20 : vector<1x32xf32> to vector<32x32xf32>
    %191 = arith.addf %189, %190 : vector<32x32xf32>
    %192 = tpu.transpose %191, [1, 0] : vector<32x32xf32> -> vector<32x32xf32>
    %193 = arith.truncf %192 : vector<32x32xf32> to vector<32x32xbf16>
    %194 = tpu.iota {dimensions = array<i32: 0>} : vector<32x16xi32>
    %195 = tpu.iota {dimensions = array<i32: 1>} : vector<32x16xi32>
    %c2_i32_50 = arith.constant 2 : i32
    %c0_i32_51 = arith.constant 0 : i32
    %196 = arith.cmpi eq, %c2_i32_50, %c0_i32_51 : i32
    %c1_i32_52 = arith.constant 1 : i32
    %197 = arith.select %196, %c1_i32_52, %c2_i32_50 : i32
    %198 = vector.broadcast %197 : i32 to vector<32x16xi32>
    %199 = arith.remsi %194, %198 : vector<32x16xi32>
    %c0_i32_53 = arith.constant 0 : i32
    %200 = vector.broadcast %c0_i32_53 : i32 to vector<32x16xi32>
    %201 = arith.cmpi ne, %199, %200 : vector<32x16xi32>
    %c0_i32_54 = arith.constant 0 : i32
    %202 = vector.broadcast %c0_i32_54 : i32 to vector<32x16xi32>
    %203 = arith.cmpi slt, %199, %202 : vector<32x16xi32>
    %c0_i32_55 = arith.constant 0 : i32
    %204 = arith.cmpi slt, %197, %c0_i32_55 : i32
    %205 = vector.broadcast %204 : i1 to vector<32x16xi1>
    %206 = vector.broadcast %205 : vector<32x16xi1> to vector<32x16xi1>
    %207 = arith.xori %203, %206 : vector<32x16xi1>
    %208 = arith.andi %207, %201 : vector<32x16xi1>
    %209 = vector.broadcast %197 : i32 to vector<32x16xi32>
    %210 = arith.addi %199, %209 : vector<32x16xi32>
    %211 = arith.select %208, %210, %199 : vector<32x16xi1>, vector<32x16xi32>
    %c2_i32_56 = arith.constant 2 : i32
    %c0_i32_57 = arith.constant 0 : i32
    %212 = arith.cmpi eq, %c2_i32_56, %c0_i32_57 : i32
    %c1_i32_58 = arith.constant 1 : i32
    %213 = arith.select %212, %c1_i32_58, %c2_i32_56 : i32
    %214 = vector.broadcast %213 : i32 to vector<32x16xi32>
    %215 = arith.remsi %195, %214 : vector<32x16xi32>
    %c0_i32_59 = arith.constant 0 : i32
    %216 = vector.broadcast %c0_i32_59 : i32 to vector<32x16xi32>
    %217 = arith.cmpi ne, %215, %216 : vector<32x16xi32>
    %c0_i32_60 = arith.constant 0 : i32
    %218 = vector.broadcast %c0_i32_60 : i32 to vector<32x16xi32>
    %219 = arith.cmpi slt, %215, %218 : vector<32x16xi32>
    %c0_i32_61 = arith.constant 0 : i32
    %220 = arith.cmpi slt, %213, %c0_i32_61 : i32
    %221 = vector.broadcast %220 : i1 to vector<32x16xi1>
    %222 = vector.broadcast %221 : vector<32x16xi1> to vector<32x16xi1>
    %223 = arith.xori %219, %222 : vector<32x16xi1>
    %224 = arith.andi %223, %217 : vector<32x16xi1>
    %225 = vector.broadcast %213 : i32 to vector<32x16xi32>
    %226 = arith.addi %215, %225 : vector<32x16xi32>
    %227 = arith.select %224, %226, %215 : vector<32x16xi1>, vector<32x16xi32>
    %228 = arith.cmpi eq, %211, %227 : vector<32x16xi32>
    %229 = vector.extract_strided_slice %187 {offsets = [0, 0], sizes = [8, 32], strides = [1, 1]} : vector<32x32xbf16> to vector<8x32xbf16>
    %230 = vector.extract_strided_slice %180 {offsets = [0, 0], sizes = [8, 16], strides = [1, 1]} : vector<32x16xbf16> to vector<8x16xbf16>
    %cst_62 = arith.constant dense<0.000000e+00> : vector<32x16xf32>
    %231 = tpu.matmul %229, %230, %cst_62 {dimension_numbers = #tpu.dot_dimension_numbers<[0], [0], [1], [1], [0, 1, 1, 1], [], []>} : vector<8x32xbf16>, vector<8x16xbf16>, vector<32x16xf32> -> vector<32x16xf32>
    %cst_63 = arith.constant -1.000000e+30 : f32
    %232 = vector.broadcast %cst_63 : f32 to vector<32x16xf32>
    %233 = arith.select %228, %231, %232 : vector<32x16xi1>, vector<32x16xf32>
    %cst_64 = arith.constant dense<0xFF800000> : vector<16xf32>
    %234 = vector.multi_reduction <maximumf>, %233, %cst_64 [0] : vector<32x16xf32> to vector<16xf32>
    %235 = vector.shape_cast %234 : vector<16xf32> to vector<1x16xf32>
    %236 = vector.broadcast %235 : vector<1x16xf32> to vector<32x16xf32>
    %237 = arith.subf %233, %236 : vector<32x16xf32>
    %238 = math.exp %237 : vector<32x16xf32>
    %cst_65 = arith.constant dense<0.000000e+00> : vector<16xf32>
    %239 = vector.multi_reduction <add>, %238, %cst_65 [0] : vector<32x16xf32> to vector<16xf32>
    %240 = vector.shape_cast %239 : vector<16xf32> to vector<1x16xf32>
    %241 = tpu.reciprocal %240 : vector<1x16xf32> -> vector<1x16xf32>
    %242 = vector.broadcast %241 : vector<1x16xf32> to vector<32x16xf32>
    %243 = arith.mulf %238, %242 : vector<32x16xf32>
    %244 = vector.extract_strided_slice %193 {offsets = [0, 0], sizes = [8, 32], strides = [1, 1]} : vector<32x32xbf16> to vector<8x32xbf16>
    %245 = arith.truncf %243 : vector<32x16xf32> to vector<32x16xbf16>
    %cst_66 = arith.constant dense<0.000000e+00> : vector<8x16xf32>
    %246 = tpu.matmul %244, %245, %cst_66 {dimension_numbers = #tpu.dot_dimension_numbers<[1], [0], [0], [1], [0, 0, 1, 1], [], []>} : vector<8x32xbf16>, vector<32x16xbf16>, vector<8x16xf32> -> vector<8x16xf32>
    %247 = vector.extract_strided_slice %187 {offsets = [8, 0], sizes = [8, 32], strides = [1, 1]} : vector<32x32xbf16> to vector<8x32xbf16>
    %248 = vector.extract_strided_slice %180 {offsets = [8, 0], sizes = [8, 16], strides = [1, 1]} : vector<32x16xbf16> to vector<8x16xbf16>
    %cst_67 = arith.constant dense<0.000000e+00> : vector<32x16xf32>
    %249 = tpu.matmul %247, %248, %cst_67 {dimension_numbers = #tpu.dot_dimension_numbers<[0], [0], [1], [1], [0, 1, 1, 1], [], []>} : vector<8x32xbf16>, vector<8x16xbf16>, vector<32x16xf32> -> vector<32x16xf32>
    %cst_68 = arith.constant -1.000000e+30 : f32
    %250 = vector.broadcast %cst_68 : f32 to vector<32x16xf32>
    %251 = arith.select %228, %249, %250 : vector<32x16xi1>, vector<32x16xf32>
    %cst_69 = arith.constant dense<0xFF800000> : vector<16xf32>
    %252 = vector.multi_reduction <maximumf>, %251, %cst_69 [0] : vector<32x16xf32> to vector<16xf32>
    %253 = vector.shape_cast %252 : vector<16xf32> to vector<1x16xf32>
    %254 = vector.broadcast %253 : vector<1x16xf32> to vector<32x16xf32>
    %255 = arith.subf %251, %254 : vector<32x16xf32>
    %256 = math.exp %255 : vector<32x16xf32>
    %cst_70 = arith.constant dense<0.000000e+00> : vector<16xf32>
    %257 = vector.multi_reduction <add>, %256, %cst_70 [0] : vector<32x16xf32> to vector<16xf32>
    %258 = vector.shape_cast %257 : vector<16xf32> to vector<1x16xf32>
    %259 = tpu.reciprocal %258 : vector<1x16xf32> -> vector<1x16xf32>
    %260 = vector.broadcast %259 : vector<1x16xf32> to vector<32x16xf32>
    %261 = arith.mulf %256, %260 : vector<32x16xf32>
    %262 = vector.extract_strided_slice %193 {offsets = [8, 0], sizes = [8, 32], strides = [1, 1]} : vector<32x32xbf16> to vector<8x32xbf16>
    %263 = arith.truncf %261 : vector<32x16xf32> to vector<32x16xbf16>
    %cst_71 = arith.constant dense<0.000000e+00> : vector<8x16xf32>
    %264 = tpu.matmul %262, %263, %cst_71 {dimension_numbers = #tpu.dot_dimension_numbers<[1], [0], [0], [1], [0, 0, 1, 1], [], []>} : vector<8x32xbf16>, vector<32x16xbf16>, vector<8x16xf32> -> vector<8x16xf32>
    %265 = vector.extract_strided_slice %187 {offsets = [16, 0], sizes = [8, 32], strides = [1, 1]} : vector<32x32xbf16> to vector<8x32xbf16>
    %266 = vector.extract_strided_slice %180 {offsets = [16, 0], sizes = [8, 16], strides = [1, 1]} : vector<32x16xbf16> to vector<8x16xbf16>
    %cst_72 = arith.constant dense<0.000000e+00> : vector<32x16xf32>
    %267 = tpu.matmul %265, %266, %cst_72 {dimension_numbers = #tpu.dot_dimension_numbers<[0], [0], [1], [1], [0, 1, 1, 1], [], []>} : vector<8x32xbf16>, vector<8x16xbf16>, vector<32x16xf32> -> vector<32x16xf32>
    %cst_73 = arith.constant -1.000000e+30 : f32
    %268 = vector.broadcast %cst_73 : f32 to vector<32x16xf32>
    %269 = arith.select %228, %267, %268 : vector<32x16xi1>, vector<32x16xf32>
    %cst_74 = arith.constant dense<0xFF800000> : vector<16xf32>
    %270 = vector.multi_reduction <maximumf>, %269, %cst_74 [0] : vector<32x16xf32> to vector<16xf32>
    %271 = vector.shape_cast %270 : vector<16xf32> to vector<1x16xf32>
    %272 = vector.broadcast %271 : vector<1x16xf32> to vector<32x16xf32>
    %273 = arith.subf %269, %272 : vector<32x16xf32>
    %274 = math.exp %273 : vector<32x16xf32>
    %cst_75 = arith.constant dense<0.000000e+00> : vector<16xf32>
    %275 = vector.multi_reduction <add>, %274, %cst_75 [0] : vector<32x16xf32> to vector<16xf32>
    %276 = vector.shape_cast %275 : vector<16xf32> to vector<1x16xf32>
    %277 = tpu.reciprocal %276 : vector<1x16xf32> -> vector<1x16xf32>
    %278 = vector.broadcast %277 : vector<1x16xf32> to vector<32x16xf32>
    %279 = arith.mulf %274, %278 : vector<32x16xf32>
    %280 = vector.extract_strided_slice %193 {offsets = [16, 0], sizes = [8, 32], strides = [1, 1]} : vector<32x32xbf16> to vector<8x32xbf16>
    %281 = arith.truncf %279 : vector<32x16xf32> to vector<32x16xbf16>
    %cst_76 = arith.constant dense<0.000000e+00> : vector<8x16xf32>
    %282 = tpu.matmul %280, %281, %cst_76 {dimension_numbers = #tpu.dot_dimension_numbers<[1], [0], [0], [1], [0, 0, 1, 1], [], []>} : vector<8x32xbf16>, vector<32x16xbf16>, vector<8x16xf32> -> vector<8x16xf32>
    %283 = vector.extract_strided_slice %187 {offsets = [24, 0], sizes = [8, 32], strides = [1, 1]} : vector<32x32xbf16> to vector<8x32xbf16>
    %284 = vector.extract_strided_slice %180 {offsets = [24, 0], sizes = [8, 16], strides = [1, 1]} : vector<32x16xbf16> to vector<8x16xbf16>
    %cst_77 = arith.constant dense<0.000000e+00> : vector<32x16xf32>
    %285 = tpu.matmul %283, %284, %cst_77 {dimension_numbers = #tpu.dot_dimension_numbers<[0], [0], [1], [1], [0, 1, 1, 1], [], []>} : vector<8x32xbf16>, vector<8x16xbf16>, vector<32x16xf32> -> vector<32x16xf32>
    %cst_78 = arith.constant -1.000000e+30 : f32
    %286 = vector.broadcast %cst_78 : f32 to vector<32x16xf32>
    %287 = arith.select %228, %285, %286 : vector<32x16xi1>, vector<32x16xf32>
    %cst_79 = arith.constant dense<0xFF800000> : vector<16xf32>
    %288 = vector.multi_reduction <maximumf>, %287, %cst_79 [0] : vector<32x16xf32> to vector<16xf32>
    %289 = vector.shape_cast %288 : vector<16xf32> to vector<1x16xf32>
    %290 = vector.broadcast %289 : vector<1x16xf32> to vector<32x16xf32>
    %291 = arith.subf %287, %290 : vector<32x16xf32>
    %292 = math.exp %291 : vector<32x16xf32>
    %cst_80 = arith.constant dense<0.000000e+00> : vector<16xf32>
    %293 = vector.multi_reduction <add>, %292, %cst_80 [0] : vector<32x16xf32> to vector<16xf32>
    %294 = vector.shape_cast %293 : vector<16xf32> to vector<1x16xf32>
    %295 = tpu.reciprocal %294 : vector<1x16xf32> -> vector<1x16xf32>
    %296 = vector.broadcast %295 : vector<1x16xf32> to vector<32x16xf32>
    %297 = arith.mulf %292, %296 : vector<32x16xf32>
    %298 = vector.extract_strided_slice %193 {offsets = [24, 0], sizes = [8, 32], strides = [1, 1]} : vector<32x32xbf16> to vector<8x32xbf16>
    %299 = arith.truncf %297 : vector<32x16xf32> to vector<32x16xbf16>
    %cst_81 = arith.constant dense<0.000000e+00> : vector<8x16xf32>
    %300 = tpu.matmul %298, %299, %cst_81 {dimension_numbers = #tpu.dot_dimension_numbers<[1], [0], [0], [1], [0, 0, 1, 1], [], []>} : vector<8x32xbf16>, vector<32x16xbf16>, vector<8x16xf32> -> vector<8x16xf32>
    %301 = tpu.concatenate %246, %264, %282, %300 in 0 : vector<8x16xf32>, vector<8x16xf32>, vector<8x16xf32>, vector<8x16xf32> -> vector<32x16xf32>
    %302 = arith.truncf %301 : vector<32x16xf32> to vector<32x16xbf16>
    %cst_82 = arith.constant dense<0.000000e+00> : vector<16x32xf32>
    %303 = tpu.matmul %302, %12, %cst_82 {dimension_numbers = #tpu.dot_dimension_numbers<[0], [0], [1], [1], [0, 1, 1, 1], [], []>} : vector<32x16xbf16>, vector<32x32xbf16>, vector<16x32xf32> -> vector<16x32xf32>
    %304 = vector.broadcast %21 : vector<1x32xf32> to vector<16x32xf32>
    %305 = arith.addf %303, %304 : vector<16x32xf32>
    %306 = arith.addf %173, %305 : vector<16x32xf32>
    %307 = vector.extract_strided_slice %5 {offsets = [11, 0], sizes = [1, 32], strides = [1, 1]} : vector<16x128xf32> to vector<1x32xf32>
    %308 = vector.extract_strided_slice %5 {offsets = [12, 0], sizes = [1, 32], strides = [1, 1]} : vector<16x128xf32> to vector<1x32xf32>
    %cst_83 = arith.constant dense<0.000000e+00> : vector<16xf32>
    %309 = vector.multi_reduction <add>, %306, %cst_83 [1] : vector<16x32xf32> to vector<16xf32>
    %310 = vector.shape_cast %309 : vector<16xf32> to vector<16x1xf32>
    %cst_84 = arith.constant 3.125000e-02 : f32
    %311 = vector.broadcast %cst_84 : f32 to vector<16x1xf32>
    %312 = arith.mulf %310, %311 : vector<16x1xf32>
    %313 = vector.broadcast %312 : vector<16x1xf32> to vector<16x32xf32>
    %314 = arith.subf %306, %313 : vector<16x32xf32>
    %315 = arith.mulf %314, %314 : vector<16x32xf32>
    %cst_85 = arith.constant dense<0.000000e+00> : vector<16xf32>
    %316 = vector.multi_reduction <add>, %315, %cst_85 [1] : vector<16x32xf32> to vector<16xf32>
    %317 = vector.shape_cast %316 : vector<16xf32> to vector<16x1xf32>
    %cst_86 = arith.constant 3.125000e-02 : f32
    %318 = vector.broadcast %cst_86 : f32 to vector<16x1xf32>
    %319 = arith.mulf %317, %318 : vector<16x1xf32>
    %cst_87 = arith.constant 9.99999974E-6 : f32
    %320 = vector.broadcast %cst_87 : f32 to vector<16x1xf32>
    %321 = arith.addf %319, %320 : vector<16x1xf32>
    %322 = math.rsqrt %321 : vector<16x1xf32>
    %323 = vector.broadcast %322 : vector<16x1xf32> to vector<16x32xf32>
    %324 = arith.mulf %314, %323 : vector<16x32xf32>
    %325 = vector.broadcast %307 : vector<1x32xf32> to vector<16x32xf32>
    %326 = arith.mulf %324, %325 : vector<16x32xf32>
    %327 = vector.broadcast %308 : vector<1x32xf32> to vector<16x32xf32>
    %328 = arith.addf %326, %327 : vector<16x32xf32>
    %329 = arith.truncf %328 : vector<16x32xf32> to vector<16x32xbf16>
    %cst_88 = arith.constant dense<0.000000e+00> : vector<16x64xf32>
    %330 = tpu.matmul %329, %13, %cst_88 {dimension_numbers = #tpu.dot_dimension_numbers<[1], [0], [0], [1], [0, 0, 1, 1], [], []>} : vector<16x32xbf16>, vector<32x64xbf16>, vector<16x64xf32> -> vector<16x64xf32>
    %331 = vector.broadcast %22 : vector<1x64xf32> to vector<16x64xf32>
    %332 = arith.addf %330, %331 : vector<16x64xf32>
    %cst_89 = arith.constant 0.000000e+00 : f32
    %333 = vector.broadcast %cst_89 : f32 to vector<16x64xf32>
    %334 = arith.maximumf %332, %333 : vector<16x64xf32>
    %335 = arith.truncf %334 : vector<16x64xf32> to vector<16x64xbf16>
    %cst_90 = arith.constant dense<0.000000e+00> : vector<16x32xf32>
    %336 = tpu.matmul %335, %14, %cst_90 {dimension_numbers = #tpu.dot_dimension_numbers<[1], [0], [0], [1], [0, 0, 1, 1], [], []>} : vector<16x64xbf16>, vector<64x32xbf16>, vector<16x32xf32> -> vector<16x32xf32>
    %337 = vector.broadcast %23 : vector<1x32xf32> to vector<16x32xf32>
    %338 = arith.addf %336, %337 : vector<16x32xf32>
    %339 = arith.addf %328, %338 : vector<16x32xf32>
    %340 = vector.extract_strided_slice %5 {offsets = [13, 0], sizes = [1, 32], strides = [1, 1]} : vector<16x128xf32> to vector<1x32xf32>
    %341 = vector.extract_strided_slice %5 {offsets = [14, 0], sizes = [1, 32], strides = [1, 1]} : vector<16x128xf32> to vector<1x32xf32>
    %cst_91 = arith.constant dense<0.000000e+00> : vector<16xf32>
    %342 = vector.multi_reduction <add>, %339, %cst_91 [1] : vector<16x32xf32> to vector<16xf32>
    %343 = vector.shape_cast %342 : vector<16xf32> to vector<16x1xf32>
    %cst_92 = arith.constant 3.125000e-02 : f32
    %344 = vector.broadcast %cst_92 : f32 to vector<16x1xf32>
    %345 = arith.mulf %343, %344 : vector<16x1xf32>
    %346 = vector.broadcast %345 : vector<16x1xf32> to vector<16x32xf32>
    %347 = arith.subf %339, %346 : vector<16x32xf32>
    %348 = arith.mulf %347, %347 : vector<16x32xf32>
    %cst_93 = arith.constant dense<0.000000e+00> : vector<16xf32>
    %349 = vector.multi_reduction <add>, %348, %cst_93 [1] : vector<16x32xf32> to vector<16xf32>
    %350 = vector.shape_cast %349 : vector<16xf32> to vector<16x1xf32>
    %cst_94 = arith.constant 3.125000e-02 : f32
    %351 = vector.broadcast %cst_94 : f32 to vector<16x1xf32>
    %352 = arith.mulf %350, %351 : vector<16x1xf32>
    %cst_95 = arith.constant 9.99999974E-6 : f32
    %353 = vector.broadcast %cst_95 : f32 to vector<16x1xf32>
    %354 = arith.addf %352, %353 : vector<16x1xf32>
    %355 = math.rsqrt %354 : vector<16x1xf32>
    %356 = vector.broadcast %355 : vector<16x1xf32> to vector<16x32xf32>
    %357 = arith.mulf %347, %356 : vector<16x32xf32>
    %358 = vector.broadcast %340 : vector<1x32xf32> to vector<16x32xf32>
    %359 = arith.mulf %357, %358 : vector<16x32xf32>
    %360 = vector.broadcast %341 : vector<1x32xf32> to vector<16x32xf32>
    %361 = arith.addf %359, %360 : vector<16x32xf32>
    %c0_96 = arith.constant 0 : index
    %c0_97 = arith.constant 0 : index
    %362 = vector.load %arg6[%c0_96, %c0_97] : memref<16x32xf32, #tpu.memory_space<vmem>>, vector<16x32xf32>
    tpu.vector_store %arg6[%c0_96, %c0_97], %361 {strides = array<i32>} : memref<16x32xf32, #tpu.memory_space<vmem>>, vector<16x32xf32>,
    return
  }
}

</mosaic_0001>

<bundles_post_ra>
// kernel: transformer_decoder_layer_mma.1
= control target key start
LH: loop header
LB: loop body
LE: loop exit
PB: predicated region body
PF: predicated region fallthrough
CT: control target
= control target key end

     0   :  { %11 = vsyncpa [#allocation3], 0  ;;  %s3494_s0 = inlined_call_operand.hbm [shape: f32[16,32], index: 0, kind: input, shape index: {}]   ;;  %s3495_s1 = inlined_call_operand.vmem [shape: f32[16,32], index: 1, kind: input, shape index: {}]   ;;  %s3496_s2 = inlined_call_operand.hbm [shape: f32[32,32], index: 2, kind: input, shape index: {}]   ;;  %s3497_s3 = inlined_call_operand.hbm [shape: f32[32,32], index: 3, kind: input, shape index: {}]   ;;  %s3498_s4 = inlined_call_operand.hbm [shape: bf16[320,128], index: 4, kind: input, shape index: {}]   ;;  %s3499_s5 = inlined_call_operand.hbm [shape: f32[16,128], index: 5, kind: input, shape index: {}]   ;;  %s3500_s6 = inlined_call_operand.hbm [shape: f32[16,32], index: 6, kind: output, shape index: {}]  }
   0x1   :  { %12 = vsyncpa [#allocation6], 0 }
   0x2   :  { %13 = vsyncpa [#allocation9], 0 }
   0x3   :  { %14 = vsyncpa [#allocation4], 0  ;;  %s2945_s21 = smov [#allocation5]   ;;  %s2946_s23 = smov [#allocation8]  }
   0x4   :  { %s34_s22 = sshll.u32 %s2945_s21, 4  ;;  %s58_s24 = sshll.u32 %s2946_s23, 4  ;;  %s35_s22 = int_to_ptr.vmem [resolvable:$true] %s34_s22  ;;  %s59_s24 = int_to_ptr.vmem [resolvable:$true] %s58_s24 }
   0x5   :  { %s2825_s25 = scalar_lea.vmem %s35_s22, 512  ;;  %p2830_p1 = scmp.lt.s32.totalorder %s35_s22, %s35_s22 }
   0x6   :  { %p2826_p0 = scmp.ne.s32.totalorder %s35_s22, %s2825_s25  ;;  %p2831_p2 = scmp.lt.s32.totalorder %s2825_s25, %s2825_s25 }
   0x8   :  { %p2832_p3 = por %p2831_p2, %p2830_p1 }
   0xa   :  { %p2833_p4 = pnand %p2832_p3, %p2826_p0 }
   0xc   :  { %2836 = shalt.err (!%p2833_p4)
}
   0xd   :  { %s2947_s26 = smov 128   ;;  %s2948_s27 = smov 8  }
   0xe   :  { %40 = dma.hbm_to_vmem [thread:$0]  %s3496_s2, 512, %s35_s22, [#allocation6], %s2947_s26, %s2947_s26, %s2948_s27  }
   0xf   :  { %s2845_s30 = scalar_lea.vmem %s59_s24, 2560  ;;  %p2850_p6 = scmp.lt.s32.totalorder %s59_s24, %s59_s24 }
  0x10   :  { %p2846_p5 = scmp.ne.s32.totalorder %s59_s24, %s2845_s30  ;;  %p2851_p7 = scmp.lt.s32.totalorder %s2845_s30, %s2845_s30 }
  0x12   :  { %p2852_p8 = por %p2851_p7, %p2850_p6 }
  0x14   :  { %p2853_p9 = pnand %p2852_p8, %p2846_p5 }
  0x16   :  { %2856 = shalt.err (!%p2853_p9)
}
  0x17   :  { %s2949_s7 = smov 64   ;;  %s2950_s8 = smov 4  }
  0x18   :  { %64 = dma.hbm_to_vmem [thread:$0]  %s3498_s4, 2560, %s59_s24, [#allocation9], %s2949_s7, %s2949_s7, %s2950_s8  }
  0x19   :  { %s2951_s11 = smov [#allocation2]   ;;  %s2952_s13 = smov [#allocation7]  }
  0x1a   :  { %s20_s12 = sshll.u32 %s2951_s11, 4  ;;  %s46_s14 = sshll.u32 %s2952_s13, 4  ;;  %s21_s12 = int_to_ptr.vmem [resolvable:$true] %s20_s12  ;;  %s47_s14 = int_to_ptr.vmem [resolvable:$true] %s46_s14 }
  0x1b   :  { %s2865_s2 = scalar_lea.vmem %s21_s12, 256  ;;  %p2870_p11 = scmp.lt.s32.totalorder %s21_s12, %s21_s12 }
  0x1c   :  { %p2866_p10 = scmp.ne.s32.totalorder %s21_s12, %s2865_s2  ;;  %p2871_p12 = scmp.lt.s32.totalorder %s2865_s2, %s2865_s2 }
  0x1e   :  { %p2872_p13 = por %p2871_p12, %p2870_p11 }
  0x20   :  { %p2873_p0 = pnand %p2872_p13, %p2866_p10 }
  0x22   :  { %2876 = shalt.err (!%p2873_p0)
}
  0x23   :  { %26 = dma.hbm_to_vmem [thread:$0]  %s3494_s0, 256, %s21_s12, [#allocation3], %s2947_s26, %s2947_s26, %s2948_s27  }
  0x24   :  { %s2885_s4 = scalar_lea.vmem %s47_s14, 512  ;;  %p2890_p2 = scmp.lt.s32.totalorder %s47_s14, %s47_s14 }
  0x25   :  { %p2886_p1 = scmp.ne.s32.totalorder %s47_s14, %s2885_s4  ;;  %p2891_p3 = scmp.lt.s32.totalorder %s2885_s4, %s2885_s4 }
  0x27   :  { %p2892_p4 = por %p2891_p3, %p2890_p2 }
  0x29   :  { %p2893_p5 = pnand %p2892_p4, %p2886_p1 }
  0x2b   :  { %2896 = shalt.err (!%p2893_p5)
}
  0x2c   :  { %52 = dma.hbm_to_vmem [thread:$0]  %s3497_s3, 512, %s47_s14, [#allocation6], %s2947_s26, %s2947_s26, %s2948_s27  }
  0x2d   :  { %s2953_s19 = smov [#allocation10]  }
  0x2e   :  { %s70_s20 = sshll.u32 %s2953_s19, 4  ;;  %s71_s20 = int_to_ptr.vmem [resolvable:$true] %s70_s20 }
  0x2f   :  { %s2905_s21 = scalar_lea.vmem %s71_s20, 256  ;;  %p2910_p7 = scmp.lt.s32.totalorder %s71_s20, %s71_s20 }
  0x30   :  { %p2906_p6 = scmp.ne.s32.totalorder %s71_s20, %s2905_s21  ;;  %p2911_p8 = scmp.lt.s32.totalorder %s2905_s21, %s2905_s21 }
  0x32   :  { %p2912_p9 = por %p2911_p8, %p2910_p7 }
  0x34   :  { %p2913_p10 = pnand %p2912_p9, %p2906_p6 }
  0x36   :  { %2916 = shalt.err (!%p2913_p10)
}
  0x37   :  { %76 = dma.hbm_to_vmem [thread:$0]  %s3499_s5, 256, %s71_s20, [#allocation9], %s2947_s26, %s2947_s26, %s2948_s27  }
  0x38   :  { %2937 = dma.done.wait [#allocation3], 256  }
  0x39   :  { %2938 = vsyncadd [#allocation3], 4294967040 }
  0x3a   :  { %2939 = dma.done.wait [#allocation6], 1024  }
  0x3b   :  { %2940 = vsyncadd [#allocation6], 4294966272 }
  0x3c   :  { %2941 = dma.done.wait [#allocation9], 2816  }
  0x3d   :  { %2942 = vsyncadd [#allocation9], 4294964480  ;;  %v2954_v0 = vmov 0.0   ;;  %vm2955_vm0 = vmmov 0   ;;  %v2720_v1 = vld [vmem:[#allocation8 + $0x8] sm:$0xff]   ;;  %v2721_v2 = vld [vmem:[#allocation8] sm:$0xff]   ;;  %v150_v10 = vlaneseq }
  0x3e   :  { %2523 = vmatprep.subr.bf16.mxu1 %v2954_v0  ;;  %2527 = vmatprep.mubr.msk.bf16.mxu1 %vm2955_vm0, %v2954_v0  ;;  %v3025_v3 = vld [vmem:[#allocation2] sm:$0xff]  ;;  %v3027_v4 = vld [vmem:[#allocation2 + $0x8] sm:$0xff]  ;;  %vm166_vm1 = vcmask 261120   ;;  %v3052_v13 = vld [vmem:[#allocation10] sm:$0xff]  ;;  %vm405_vm2 = vcmask 1043456   ;;  %vm401_vm3 = vcmask 64512  }
  0x3f   :  { %2539 = vmatprep.subr.bf16.mxu0 %v2954_v0  ;;  %2541 = vmatprep.mubr.msk.bf16.mxu0 %vm2955_vm0, %v2954_v0  ;;  %v3032_v5 = vld [vmem:[%s3495_s1] sm:$0xff]  ;;  %v3038_v6 = vld [vmem:[%s3495_s1 + $0x8] sm:$0xff]  ;;  %v3049_v11 = vshrl.u32 %v150_v10, 7  ;;  %v247_v23 = vpack.c.bf16 %v3027_v4, %v3025_v3  ;;  %v346_v56 = vand.u32 127, %v150_v10  ;;  %vm452_vm6 = vcmask 130048   ;;  %s2956_s1 = smov [#allocation11]  }
  0x40   :  { %2524 = vmatpush3.bf16.msra.mxu1 %v2720_v1  ;;  %v147_v7 = vadd.f32 %v3032_v5, %v3025_v3  ;;  %v148_v8 = vadd.f32 %v3038_v6, %v3027_v4  ;;  %v2722_v21 = vld [vmem:[#allocation8 + $0x18] sm:$0xff]   ;;  %v2723_v22 = vld [vmem:[#allocation8 + $0x10] sm:$0xff]   ;;  %vm2295_vm9 = vcmask 523264   ;;  %s2387_s25 = sshll.u32 %s2956_s1, 4  ;;  %s2388_s25 = int_to_ptr.vmem [resolvable:$true] %s2387_s25 }
  0x41   :  { %2525 = vmatprep.subr.bf16.mxu1 %v2954_v0  ;;  %v152_v12 = vsub.s32 0, %v3049_v11  ;;  %v250_v39 = vsub.s32 1, %v3049_v11  ;;  %v344_v57 = vadd.s32 8, %v3049_v11  ;;  %v351_v58 = vand.u32 1, %v3049_v11  ;;  %s2917_s28 = scalar_lea.vmem %s2388_s25, 256  ;;  %p2922_p12 = scmp.lt.s32.totalorder %s2388_s25, %s2388_s25 }
  0x42   :  { %v149_v9 = vpack.c.bf16 %v148_v8, %v147_v7  ;;  %v3091_v59 = vand.u32 1, %v346_v56  ;;  %p2918_p11 = scmp.ne.s32.totalorder %s2388_s25, %s2917_s28  ;;  %p2923_p13 = scmp.lt.s32.totalorder %s2917_s28, %s2917_s28 }
  0x43   :  { %v153_v14 = vrot.slane %v3052_v13, %v152_v12  ;;  %v251_v40 = vrot.slane %v3052_v13, %v250_v39  ;;  %v358_v60 = vand.u32 1, %v344_v57 }
  0x44   :  { %2526 = vmatpush3.bf16.msra.mxu1 %v2721_v2  ;;  %vm3094_vm4 = vcmp.eq.s32.totalorder %v351_v58, %v3091_v59  ;;  %p2924_p0 = por %p2923_p13, %p2922_p12 }
  0x45   :  { %2531 = vmatprep.subr.bf16.mxu1 %v2954_v0  ;;  %vm3099_vm5 = vcmp.eq.s32.totalorder %v358_v60, %v3091_v59 }
  0x46   :  { %p2925_p1 = pnand %p2924_p0, %p2918_p11 }
  0x47   :  { %2528 = vmatmul.mubr.msk.bf16.vlgmr.msra.gmra.mxu1 %vm166_vm1, %v149_v9 }
  0x48   :  { %2535 = vmatprep.mubr.msk.bf16.mxu1 %vm2955_vm0, %v2954_v0  ;;  %2532 = vmatpush3.bf16.msra.mxu1 %v2722_v21 }
  0x49   :  { %2533 = vmatprep.subr.bf16.mxu1 %v2954_v0 }
  0x4c   :  { %2534 = vmatpush3.bf16.msra.mxu1 %v2723_v22 }
  0x4d   :  { %2545 = vmatprep.subr.bf16.mxu1 %v2954_v0 }
  0x4f   :  { %2536 = vmatmul.mubr.msk.bf16.vlgmr.msra.gmra.mxu1 %vm166_vm1, %v247_v23 }
  0x50   :  { %2547 = vmatprep.mubr.msk.bf16.mxu1 %vm2955_vm0, %v2954_v0 }
 0x107   :  { %v204_v15 = vpop.f32.mrf.mxu1 }
 0x108   :  { %v205_v16 = vadd.f32 %v204_v15, %v153_v14 }
 0x109   :  { %v2529_v17 = vpop.f32.mrf.mxu1 }
 0x10a   :  { %211 = vxpose.xlu0.b32.start [1/2] (short) (narrow) %v205_v16, 64 }
 0x10b   :  { %v207_v18 = vpop.f32.mrf.mxu1 }
 0x10c   :  { %v208_v19 = vadd.f32 %v207_v18, %v153_v14 }
 0x10d   :  { %v2530_v20 = vpop.f32.mrf.mxu1 }
 0x10e   :  { %212 = vxpose.xlu0.b32.end [2/2] (short) (narrow) %v208_v19, 64 }
 0x10f   :  { %v301_v41 = vpop.f32.mrf.mxu1 }
 0x110   :  { %v302_v42 = vadd.f32 %v301_v41, %v251_v40 }
 0x111   :  { %v2537_v43 = vpop.f32.mrf.mxu1 }
 0x113   :  { %v304_v44 = vpop.f32.mrf.mxu1 }
 0x114   :  { %v305_v45 = vadd.f32 %v304_v44, %v251_v40 }
 0x115   :  { %v2538_v46 = vpop.f32.mrf.mxu1 }
 0x186   :  { %v227_v24 = vpop.trf.xlu0 }
 0x18a   :  { %v228_v25 = vpop.trf.xlu0 }
 0x18b   :  { %v243_v26 = vpack.c.bf16 %v228_v25, %v227_v24 }
 0x18d   :  { %v407_v27 = vsel %vm405_vm2, %v243_v26, 0  ;;  %v544_v47 = vrot.slane %v243_v26, 4 }
 0x18e   :  { %2540 = vmatpush3.bf16.msra.mxu0 %v407_v27  ;;  %v229_v28 = vpop.trf.xlu0 }
 0x18f   :  { %2551 = vmatprep.subr.bf16.mxu0 %v2954_v0  ;;  %v549_v49 = vsel %vm405_vm2, %v544_v47, 0 }
 0x192   :  { %v230_v29 = vpop.trf.xlu0 }
 0x193   :  { %v244_v30 = vpack.c.bf16 %v230_v29, %v229_v28 }
 0x195   :  { %v687_v51 = vsel %vm405_vm2, %v244_v30, 0  ;;  %v823_v52 = vrot.slane %v244_v30, 4 }
 0x196   :  { %v231_v31 = vpop.trf.xlu0 }
 0x197   :  { %v828_v54 = vsel %vm405_vm2, %v823_v52, 0 }
 0x19a   :  { %v232_v32 = vpop.trf.xlu0 }
 0x19b   :  { %v245_v33 = vpack.c.bf16 %v232_v32, %v231_v31 }
 0x19d   :  { %385 = vxpose.xlu1.c.b16.start.end [1/1] (short) (narrow) %v245_v33, 16  ;;  %v525_v35 = vrot.slane %v245_v33, 4 }
 0x19e   :  { %v233_v34 = vpop.trf.xlu0 }
 0x1a1   :  { %527 = vxpose.xlu1.c.b16.start.end [1/1] (short) (narrow) %v525_v35, 16 }
 0x1a2   :  { %v234_v36 = vpop.trf.xlu0 }
 0x1a3   :  { %v246_v37 = vpack.c.bf16 %v234_v36, %v233_v34 }
 0x1a5   :  { %667 = vxpose.xlu0.c.b16.start.end [1/1] (short) (narrow) %v246_v37, 16  ;;  %v804_v38 = vrot.slane %v246_v37, 4 }
 0x1a7   :  { %806 = vxpose.xlu1.c.b16.start.end [1/1] (short) (narrow) %v804_v38, 16 }
 0x1b1   :  { %308 = vxpose.xlu1.b32.start [1/2] (short) (narrow) %v302_v42, 32 }
 0x1b5   :  { %309 = vxpose.xlu1.b32.end [2/2] (short) (narrow) %v305_v45, 32 }
 0x1ff   :  { %v393_v48 = vpop.trf.xlu1 }
 0x200   :  { %2542 = vmatmul.mubr.msk.bf16.vlgmr.msra.gmra.mxu0 %vm401_vm3, %v393_v48 }
 0x201   :  { %2552 = vmatpush3.bf16.msra.mxu0 %v549_v49  ;;  %2553 = vmatprep.mubr.msk.bf16.mxu0 %vm2955_vm0, %v2954_v0 }
 0x202   :  { %2563 = vmatprep.subr.bf16.mxu0 %v2954_v0 }
 0x203   :  { %v535_v50 = vpop.trf.xlu1 }
 0x207   :  { %v675_v53 = vpop.trf.xlu0 }
 0x208   :  { %2554 = vmatmul.mubr.msk.bf16.vlgmr.msra.gmra.mxu0 %vm401_vm3, %v535_v50 }
 0x209   :  { %2564 = vmatpush3.bf16.msra.mxu0 %v687_v51  ;;  %2565 = vmatprep.mubr.msk.bf16.mxu0 %vm2955_vm0, %v2954_v0  ;;  %v814_v55 = vpop.trf.xlu1 }
 0x20a   :  { %2575 = vmatprep.subr.bf16.mxu0 %v2954_v0 }
 0x210   :  { %2566 = vmatmul.mubr.msk.bf16.vlgmr.msra.gmra.mxu0 %vm401_vm3, %v675_v53 }
 0x211   :  { %2576 = vmatpush3.bf16.msra.mxu0 %v828_v54  ;;  %2577 = vmatprep.mubr.msk.bf16.mxu0 %vm2955_vm0, %v2954_v0 }
 0x212   :  { %2587 = vmatprep.subr.bf16.mxu0 %v2954_v0 }
 0x218   :  { %2578 = vmatmul.mubr.msk.bf16.vlgmr.msra.gmra.mxu0 %vm401_vm3, %v814_v55 }
 0x219   :  { %2591 = vmatprep.mubr.msk.bf16.mxu0 %vm2955_vm0, %v2954_v0 }
 0x2c0   :  { %v443_v62 = vpop.f32.mrf.mxu0 }
 0x2c1   :  { %v450_v2 = vsel %vm3094_vm4, %v443_v62, -1e+30 }
 0x2c2   :  { %v2543_v63 = vpop.f32.mrf.mxu0  ;;  %v453_v9 = vsel %vm452_vm6, %v450_v2, -inf }
 0x2c4   :  { %v446_v7 = vpop.f32.mrf.mxu0 }
 0x2c5   :  { %v451_v8 = vsel %vm3099_vm5, %v446_v7, -1e+30 }
 0x2c6   :  { %v454_v10 = vsel %vm452_vm6, %v451_v8, -inf  ;;  %v2544_v14 = vpop.f32.mrf.mxu0 }
 0x2c7   :  { %v455_v15 = vmax.f32 %v453_v9, %v454_v10 }
 0x2c8   :  { %v585_v16 = vpop.f32.mrf.mxu0 }
 0x2c9   :  { %v456_v17 = vrot.slane %v455_v15, 4  ;;  %v592_v20 = vsel %vm3094_vm4, %v585_v16, -1e+30 }
 0x2ca   :  { %v2555_v18 = vpop.f32.mrf.mxu0  ;;  %v594_v24 = vsel %vm452_vm6, %v592_v20, -inf }
 0x2cb   :  { %v457_v19 = vmax.f32 %v455_v15, %v456_v17 }
 0x2cc   :  { %v588_v21 = vpop.f32.mrf.mxu0 }
 0x2cd   :  { %v458_v22 = vrot.slane %v457_v19, 2  ;;  %v593_v23 = vsel %vm3099_vm5, %v588_v21, -1e+30 }
 0x2ce   :  { %v595_v25 = vsel %vm452_vm6, %v593_v23, -inf  ;;  %v2556_v26 = vpop.f32.mrf.mxu0 }
 0x2cf   :  { %v459_v27 = vmax.f32 %v457_v19, %v458_v22  ;;  %v596_v28 = vmax.f32 %v594_v24, %v595_v25 }
 0x2d0   :  { %v723_v29 = vpop.f32.mrf.mxu0 }
 0x2d1   :  { %v460_v30 = vrot.slane %v459_v27, 1  ;;  %v597_v31 = vrot.slane %v596_v28, 4  ;;  %v730_v35 = vsel %vm3094_vm4, %v723_v29, -1e+30 }
 0x2d2   :  { %v2567_v32 = vpop.f32.mrf.mxu0  ;;  %v732_v42 = vsel %vm452_vm6, %v730_v35, -inf }
 0x2d3   :  { %v461_v33 = vmax.f32 %v459_v27, %v460_v30  ;;  %v598_v34 = vmax.f32 %v596_v28, %v597_v31 }
 0x2d4   :  { %v726_v36 = vpop.f32.mrf.mxu0 }
 0x2d5   :  { %v462_v37 = vsub.f32 %v450_v2, %v461_v33  ;;  %v463_v38 = vsub.f32 %v451_v8, %v461_v33  ;;  %v599_v40 = vrot.slane %v598_v34, 2  ;;  %v731_v41 = vsel %vm3099_vm5, %v726_v36, -1e+30 }
 0x2d6   :  { %v733_v43 = vsel %vm452_vm6, %v731_v41, -inf  ;;  %v2568_v44 = vpop.f32.mrf.mxu0 }
 0x2d7   :  { %v464_v45 = vmul.f32 1.442695, %v462_v37  ;;  %v466_v46 = vmul.f32 1.442695, %v463_v38  ;;  %v600_v47 = vmax.f32 %v598_v34, %v599_v40  ;;  %v734_v48 = vmax.f32 %v732_v42, %v733_v43 }
 0x2d8   :  { %v864_v49 = vpop.f32.mrf.mxu0 }
 0x2d9   :  { %2740 = vpow2.f32 %v464_v45  ;;  %v601_v50 = vrot.slane %v600_v47, 1  ;;  %v735_v51 = vrot.slane %v734_v48, 4  ;;  %v871_v55 = vsel %vm3094_vm4, %v864_v49, -1e+30 }
 0x2da   :  { %2742 = vpow2.f32 %v466_v46  ;;  %v2579_v52 = vpop.f32.mrf.mxu0  ;;  %v873_v63 = vsel %vm452_vm6, %v871_v55, -inf }
 0x2db   :  { %v602_v53 = vmax.f32 %v600_v47, %v601_v50  ;;  %v736_v54 = vmax.f32 %v734_v48, %v735_v51 }
 0x2dc   :  { %v867_v56 = vpop.f32.mrf.mxu0 }
 0x2dd   :  { %v603_v57 = vsub.f32 %v592_v20, %v602_v53  ;;  %v604_v58 = vsub.f32 %v593_v23, %v602_v53  ;;  %v737_v60 = vrot.slane %v736_v54, 2  ;;  %v872_v62 = vsel %vm3099_vm5, %v867_v56, -1e+30 }
 0x2de   :  { %v874_v2 = vsel %vm452_vm6, %v872_v62, -inf  ;;  %v2580_v7 = vpop.f32.mrf.mxu0 }
 0x2df   :  { %v605_v8 = vmul.f32 1.442695, %v603_v57  ;;  %v607_v9 = vmul.f32 1.442695, %v604_v58  ;;  %v738_v10 = vmax.f32 %v736_v54, %v737_v60  ;;  %v875_v14 = vmax.f32 %v873_v63, %v874_v2 }
 0x2e1   :  { %2744 = vpow2.f32 %v605_v8  ;;  %v739_v15 = vrot.slane %v738_v10, 1  ;;  %v876_v16 = vrot.slane %v875_v14, 4 }
 0x2e2   :  { %2746 = vpow2.f32 %v607_v9 }
 0x2e3   :  { %v740_v17 = vmax.f32 %v738_v10, %v739_v15  ;;  %v877_v18 = vmax.f32 %v875_v14, %v876_v16  ;;  %v324_v15 = vpop.trf.xlu1 }
 0x2e5   :  { %v741_v19 = vsub.f32 %v730_v35, %v740_v17  ;;  %v742_v20 = vsub.f32 %v731_v41, %v740_v17  ;;  %v878_v21 = vrot.slane %v877_v18, 2 }
 0x2e6   :  { %v2741_v22 = vpop.eup %2740 }
 0x2e7   :  { %v2743_v23 = vpop.eup %2742  ;;  %v468_v24 = vsel %vm452_vm6, %v2741_v22, 0.0  ;;  %v743_v25 = vmul.f32 1.442695, %v741_v19  ;;  %v745_v26 = vmul.f32 1.442695, %v742_v20  ;;  %v879_v27 = vmax.f32 %v877_v18, %v878_v21 }
 0x2e8   :  { %v469_v28 = vsel %vm452_vm6, %v2743_v23, 0.0 }
 0x2e9   :  { %v470_v29 = vadd.f32 %v469_v28, %v468_v24  ;;  %2748 = vpow2.f32 %v743_v25  ;;  %v880_v30 = vrot.slane %v879_v27, 1 }
 0x2ea   :  { %2750 = vpow2.f32 %v745_v26  ;;  %v325_v26 = vpop.trf.xlu1 }
 0x2eb   :  { %v471_v31 = vrot.slane %v470_v29, 4  ;;  %v881_v32 = vmax.f32 %v879_v27, %v880_v30 }
 0x2ed   :  { %v472_v33 = vadd.f32 %v471_v31, %v470_v29  ;;  %v882_v34 = vsub.f32 %v871_v55, %v881_v32  ;;  %v883_v35 = vsub.f32 %v872_v62, %v881_v32  ;;  %v340_v29 = vpack.c.bf16 %v325_v26, %v324_v15 }
 0x2ee   :  { %v2745_v36 = vpop.eup %2744 }
 0x2ef   :  { %v2747_v37 = vpop.eup %2746  ;;  %v473_v38 = vrot.slane %v472_v33, 2  ;;  %v609_v40 = vsel %vm452_vm6, %v2745_v36, 0.0  ;;  %v884_v41 = vmul.f32 1.442695, %v882_v34  ;;  %v886_v42 = vmul.f32 1.442695, %v883_v35 }
 0x2f0   :  { %v610_v43 = vsel %vm452_vm6, %v2747_v37, 0.0  ;;  %v623_v35 = vrot.slane %v340_v29, 4 }
 0x2f1   :  { %v474_v44 = vadd.f32 %v473_v38, %v472_v33  ;;  %v611_v45 = vadd.f32 %v610_v43, %v609_v40  ;;  %2752 = vpow2.f32 %v884_v41 }
 0x2f2   :  { %2754 = vpow2.f32 %v886_v42 }
 0x2f3   :  { %v475_v46 = vrot.slane %v474_v44, 1  ;;  %v612_v47 = vrot.slane %v611_v45, 4 }
 0x2f5   :  { %v476_v48 = vadd.f32 %v475_v46, %v474_v44  ;;  %v613_v49 = vadd.f32 %v612_v47, %v611_v45 }
 0x2f6   :  { %v2749_v50 = vpop.eup %2748 }
 0x2f7   :  { %v2751_v51 = vpop.eup %2750  ;;  %v614_v52 = vrot.slane %v613_v49, 2  ;;  %v747_v53 = vsel %vm452_vm6, %v2749_v50, 0.0  ;;  %2756 = vrcp.f32 %v476_v48  ;;  %v2724_v48 = vld [vmem:[#allocation8 + $0x28] sm:$0xff]  }
 0x2f8   :  { %v748_v54 = vsel %vm452_vm6, %v2751_v51, 0.0  ;;  %2588 = vmatpush3.bf16.msra.mxu0 %v2724_v48 }
 0x2f9   :  { %v615_v55 = vadd.f32 %v614_v52, %v613_v49  ;;  %v749_v56 = vadd.f32 %v748_v54, %v747_v53  ;;  %v2725_v49 = vld [vmem:[#allocation8 + $0x20] sm:$0xff]   ;;  %2589 = vmatprep.subr.bf16.mxu0 %v2954_v0 }
 0x2fb   :  { %v616_v57 = vrot.slane %v615_v55, 1  ;;  %v750_v58 = vrot.slane %v749_v56, 4 }
 0x2fc   :  { %2590 = vmatpush3.bf16.msra.mxu0 %v2725_v49 }
 0x2fd   :  { %v617_v60 = vadd.f32 %v616_v57, %v615_v55  ;;  %v751_v62 = vadd.f32 %v750_v58, %v749_v56 }
 0x2fe   :  { %v2753_v63 = vpop.eup %2752 }
 0x2ff   :  { %v2755_v2 = vpop.eup %2754  ;;  %v752_v7 = vrot.slane %v751_v62, 2  ;;  %v888_v8 = vsel %vm452_vm6, %v2753_v63, 0.0  ;;  %2758 = vrcp.f32 %v617_v60 }
 0x300   :  { %v889_v9 = vsel %vm452_vm6, %v2755_v2, 0.0 }
 0x301   :  { %v753_v10 = vadd.f32 %v752_v7, %v751_v62  ;;  %v890_v14 = vadd.f32 %v889_v9, %v888_v8 }
 0x303   :  { %v754_v16 = vrot.slane %v753_v10, 1  ;;  %v891_v17 = vrot.slane %v890_v14, 4 }
 0x304   :  { %v2757_v18 = vpop.eup %2756 }
 0x305   :  { %v755_v19 = vadd.f32 %v754_v16, %v753_v10  ;;  %v892_v20 = vadd.f32 %v891_v17, %v890_v14  ;;  %v478_v21 = vmul.f32 %v2757_v18, %v2741_v22  ;;  %v479_v24 = vmul.f32 %v2757_v18, %v2743_v23  ;;  %v326_v23 = vpop.trf.xlu1 }
 0x306   :  { %v950_v16 = vsub.s32 2, %v3049_v11 }
 0x307   :  { %v893_v25 = vrot.slane %v892_v20, 2  ;;  %v480_v27 = vpack.c.bf16 %v479_v24, %v478_v21  ;;  %2760 = vrcp.f32 %v755_v19 }
 0x308   :  { %v951_v17 = vrot.slane %v3052_v13, %v950_v16 }
 0x309   :  { %v894_v28 = vadd.f32 %v893_v25, %v892_v20  ;;  %2546 = vmatpush3.bf16.msra.mxu1 %v480_v27 }
 0x30a   :  { %2557 = vmatprep.subr.bf16.mxu1 %v2954_v0 }
 0x30b   :  { %v895_v30 = vrot.slane %v894_v28, 1 }
 0x30c   :  { %v2759_v31 = vpop.eup %2758  ;;  %2548 = vmatmul.mubr.msk.bf16.vlgmr.msra.gmra.mxu1 %vm452_vm6, %v340_v29 }
 0x30d   :  { %v896_v32 = vadd.f32 %v895_v30, %v894_v28  ;;  %v619_v33 = vmul.f32 %v2759_v31, %v2745_v36  ;;  %v620_v34 = vmul.f32 %v2759_v31, %v2747_v37  ;;  %2559 = vmatprep.mubr.msk.bf16.mxu1 %vm2955_vm0, %v2954_v0  ;;  %v327_v36 = vpop.trf.xlu1  ;;  %v2726_v30 = vld [vmem:[#allocation8 + $0x48] sm:$0xff]   ;;  %v2727_v31 = vld [vmem:[#allocation8 + $0x40] sm:$0xff]  }
 0x30e   :  { %v341_v42 = vpack.c.bf16 %v327_v36, %v326_v23  ;;  %2603 = vmatprep.subr.bf16.mxu0 %v2726_v30 }
 0x30f   :  { %v621_v22 = vpack.c.bf16 %v620_v34, %v619_v33  ;;  %2762 = vrcp.f32 %v896_v32  ;;  %v3161_v32 = vld [vmem:[#allocation5] sm:$0xff]  ;;  %v3163_v33 = vld [vmem:[#allocation5 + $0x8] sm:$0xff] }
 0x310   :  { %v902_v47 = vrot.slane %v341_v42, 4  ;;  %v102_v34 = vld [vmem:[#allocation7 + $0x8] sm:$0xff] }
 0x311   :  { %2558 = vmatpush3.bf16.msra.mxu1 %v621_v22  ;;  %v3165_v22 = vld [vmem:[#allocation5 + $0x10] sm:$0xff] }
 0x312   :  { %2569 = vmatprep.subr.bf16.mxu1 %v2954_v0 }
 0x314   :  { %v2761_v38 = vpop.eup %2760  ;;  %2560 = vmatmul.mubr.msk.bf16.vlgmr.msra.gmra.mxu1 %vm452_vm6, %v623_v35  ;;  %v3169_v35 = vld [vmem:[#allocation5 + $0x18] sm:$0xff] }
 0x315   :  { %v757_v40 = vmul.f32 %v2761_v38, %v2749_v50  ;;  %v758_v41 = vmul.f32 %v2761_v38, %v2751_v51  ;;  %2571 = vmatprep.mubr.msk.bf16.mxu1 %vm2955_vm0, %v2954_v0  ;;  %v103_v38 = vld [vmem:[#allocation7 + $0x10] sm:$0xff] }
 0x317   :  { %v759_v37 = vpack.c.bf16 %v758_v41, %v757_v40  ;;  %v104_v40 = vld [vmem:[#allocation7 + $0x18] sm:$0xff]  ;;  %v1163_v41 = vadd.f32 %v103_v38, %v3165_v22 }
 0x318   :  { %v1164_v36 = vadd.f32 %v104_v40, %v3169_v35 }
 0x319   :  { %2570 = vmatpush3.bf16.msra.mxu1 %v759_v37 }
 0x31a   :  { %2581 = vmatprep.subr.bf16.mxu1 %v2954_v0 }
 0x31c   :  { %v2763_v43 = vpop.eup %2762  ;;  %2572 = vmatmul.mubr.msk.bf16.vlgmr.msra.gmra.mxu1 %vm452_vm6, %v341_v42  ;;  %v1166_v42 = vpack.c.bf16 %v1164_v36, %v1163_v41 }
 0x31d   :  { %v898_v44 = vmul.f32 %v2763_v43, %v2753_v63  ;;  %v899_v45 = vmul.f32 %v2763_v43, %v2755_v2  ;;  %2583 = vmatprep.mubr.msk.bf16.mxu1 %vm2955_vm0, %v2954_v0 }
 0x31f   :  { %v900_v46 = vpack.c.bf16 %v899_v45, %v898_v44 }
 0x321   :  { %2582 = vmatpush3.bf16.msra.mxu1 %v900_v46 }
 0x322   :  { %2595 = vmatprep.subr.bf16.mxu1 %v2954_v0 }
 0x324   :  { %2584 = vmatmul.mubr.msk.bf16.vlgmr.msra.gmra.mxu1 %vm452_vm6, %v902_v47 }
 0x325   :  { %2599 = vmatprep.mubr.msk.bf16.mxu1 %vm2955_vm0, %v2954_v0 }
 0x3cc   :  { %v518_v50 = vpop.f32.mrf.mxu1 }
 0x3ce   :  { %v2549_v51 = vpop.f32.mrf.mxu1 }
 0x3d0   :  { %v521_v52 = vpop.f32.mrf.mxu1 }
 0x3d2   :  { %v2550_v53 = vpop.f32.mrf.mxu1 }
 0x3d3   :  { %v2728_v53 = vld [vmem:[#allocation8 + $0x38] sm:$0xff]  }
 0x3d4   :  { %v661_v54 = vpop.f32.mrf.mxu1  ;;  %2596 = vmatpush3.bf16.msra.mxu1 %v2728_v53 }
 0x3d5   :  { %v946_v55 = vpack.c.bf16 %v661_v54, %v518_v50  ;;  %v2729_v54 = vld [vmem:[#allocation8 + $0x30] sm:$0xff]   ;;  %2597 = vmatprep.subr.bf16.mxu1 %v2954_v0 }
 0x3d6   :  { %v2561_v56 = vpop.f32.mrf.mxu1 }
 0x3d7   :  { %952 = vxpose.xlu1.c.b16.start [1/2] (short) (narrow) %v946_v55, 16  ;;  %v1169_v55 = vsub.s32 4, %v3049_v11 }
 0x3d8   :  { %v664_v57 = vpop.f32.mrf.mxu1  ;;  %2598 = vmatpush3.bf16.msra.mxu1 %v2729_v54 }
 0x3d9   :  { %v1170_v56 = vrot.slane %v3052_v13, %v1169_v55 }
 0x3da   :  { %v2562_v58 = vpop.f32.mrf.mxu1 }
 0x3dc   :  { %v797_v60 = vpop.f32.mrf.mxu1 }
 0x3de   :  { %v2573_v62 = vpop.f32.mrf.mxu1 }
 0x3e0   :  { %v800_v63 = vpop.f32.mrf.mxu1 }
 0x3e2   :  { %v2574_v2 = vpop.f32.mrf.mxu1 }
 0x3e4   :  { %v940_v7 = vpop.f32.mrf.mxu1 }
 0x3e5   :  { %v947_v8 = vpack.c.bf16 %v940_v7, %v797_v60 }
 0x3e6   :  { %v2585_v9 = vpop.f32.mrf.mxu1 }
 0x3e7   :  { %953 = vxpose.xlu1.c.b16.end [2/2] (short) (narrow) %v947_v8, 16 }
 0x3e8   :  { %v943_v10 = vpop.f32.mrf.mxu1 }
 0x3ea   :  { %v2586_v14 = vpop.f32.mrf.mxu1 }
 0x445   :  { %v960_v15 = vpop.trf.xlu1 }
 0x446   :  { %2592 = vmatmul.mubr.msk.bf16.vlgmr.msra.gmra.mxu0 %vm166_vm1, %v960_v15 }
 0x447   :  { %2604 = vmatpush3.bf16.msra.mxu0 %v2726_v30 }
 0x448   :  { %2605 = vmatprep.subr.bf16.mxu0 %v2727_v31 }
 0x44b   :  { %2606 = vmatpush3.bf16.msra.mxu0 %v2727_v31 }
 0x506   :  { %v1017_v18 = vpop.f32.mrf.mxu0 }
 0x507   :  { %v1018_v19 = vadd.f32 %v1017_v18, %v951_v17 }
 0x508   :  { %v2593_v20 = vpop.f32.mrf.mxu0 }
 0x509   :  { %v1024_v21 = vadd.f32 %v1018_v19, %v3025_v3  ;;  %v101_v3 = vld [vmem:[#allocation7] sm:$0xff]  ;;  %v3182_v19 = vld [vmem:[#allocation10 + $0x8] sm:$0xff] }
 0x50a   :  { %v1020_v24 = vpop.f32.mrf.mxu0  ;;  %v1161_v23 = vadd.f32 %v101_v3, %v3161_v32  ;;  %v1055_v20 = vrot.slane %v3182_v19, %v250_v39 }
 0x50b   :  { %v1021_v25 = vadd.f32 %v1020_v24, %v951_v17  ;;  %v1026_v26 = vsel %vm166_vm1, %v1024_v21, 0.0 }
 0x50c   :  { %1027 = vadd.xlane.f32.xlu0 %v1026_v26  ;;  %v2594_v27 = vpop.f32.mrf.mxu0 }
 0x50d   :  { %v1025_v28 = vadd.f32 %v1021_v25, %v3027_v4  ;;  %v1162_v4 = vadd.f32 %v102_v34, %v3163_v33  ;;  %v1061_v25 = vrot.slane %v3182_v19, %v950_v16 }
 0x50f   :  { %v1029_v29 = vsel %vm166_vm1, %v1025_v28, 0.0  ;;  %v1165_v37 = vpack.c.bf16 %v1162_v4, %v1161_v23 }
 0x510   :  { %1030 = vadd.xlane.f32.xlu1 %v1029_v29 }
 0x511   :  { %2607 = vmatprep.mubr.msk.bf16.mxu0 %vm166_vm1, %v1165_v37  ;;  %v2730_v37 = vld [vmem:[#allocation8 + $0x58] sm:$0xff]  }
 0x512   :  { %2608 = vmatmul.mubr.msk.bf16.vlgmr.msra.gmra.mxu0 %vm166_vm1, %v1166_v42  ;;  %v2731_v42 = vld [vmem:[#allocation8 + $0x50] sm:$0xff]   ;;  %2611 = vmatprep.subr.bf16.mxu1 %v2730_v37 }
 0x595   :  { %v1028_v43 = vpop.xlane.xlu0 %1027 }
 0x596   :  { %v1032_v44 = vmul.f32 0.03125, %v1028_v43 }
 0x598   :  { %v1034_v45 = vsub.f32 %v1024_v21, %v1032_v44 }
 0x599   :  { %v1031_v46 = vpop.xlane.xlu1 %1030 }
 0x59a   :  { %v1033_v47 = vmul.f32 0.03125, %v1031_v46  ;;  %v1036_v48 = vmul.f32 %v1034_v45, %v1034_v45 }
 0x59c   :  { %v1035_v49 = vsub.f32 %v1025_v28, %v1033_v47  ;;  %v1038_v50 = vsel %vm166_vm1, %v1036_v48, 0.0 }
 0x59d   :  { %1039 = vadd.xlane.f32.xlu0 %v1038_v50 }
 0x59e   :  { %v1037_v51 = vmul.f32 %v1035_v49, %v1035_v49 }
 0x5a0   :  { %v1041_v52 = vsel %vm166_vm1, %v1037_v51, 0.0 }
 0x5a1   :  { %1042 = vadd.xlane.f32.xlu1 %v1041_v52 }
 0x5d2   :  { %v2609_v57 = vpop.f32.mrf.mxu0 }
 0x5d3   :  { %v1232_v7 = vadd.f32 %v2609_v57, %v1170_v56 }
 0x5d4   :  { %v1223_v58 = vpop.f32.mrf.mxu0 }
 0x5d5   :  { %v1224_v60 = vadd.f32 %v1223_v58, %v1170_v56 }
 0x5d6   :  { %v2610_v62 = vpop.f32.mrf.mxu0 }
 0x5d7   :  { %1238 = vxpose.xlu0.b32.start [1/4] (short) (narrow) %v1224_v60, 32  ;;  %v1235_v8 = vadd.f32 %v2610_v62, %v1170_v56 }
 0x5d8   :  { %v1226_v63 = vpop.f32.mrf.mxu0 }
 0x5d9   :  { %v1227_v2 = vadd.f32 %v1226_v63, %v1170_v56 }
 0x5db   :  { %1239 = vxpose.xlu0.b32.cont [2/4] (short) (narrow) %v1227_v2, 32 }
 0x5df   :  { %1240 = vxpose.xlu0.b32.cont [3/4] (short) (narrow) %v1232_v7, 32 }
 0x5e3   :  { %1241 = vxpose.xlu0.b32.end [4/4] (short) (narrow) %v1235_v8, 32 }
 0x626   :  { %v1040_v9 = vpop.xlane.xlu0 %1039 }
 0x627   :  { %v1044_v10 = vmul.f32 0.03125, %v1040_v9 }
 0x629   :  { %v1046_v14 = vadd.f32 1e-05, %v1044_v10 }
 0x62a   :  { %v1043_v15 = vpop.xlane.xlu1 %1042 }
 0x62b   :  { %2764 = vrsqrt.f32 %v1046_v14  ;;  %v1045_v17 = vmul.f32 0.03125, %v1043_v15 }
 0x62d   :  { %v1047_v18 = vadd.f32 1e-05, %v1045_v17 }
 0x62f   :  { %2766 = vrsqrt.f32 %v1047_v18 }
 0x638   :  { %v2765_v21 = vpop.eup %2764 }
 0x639   :  { %v1050_v24 = vmul.f32 %v2765_v21, %v1034_v45 }
 0x63b   :  { %v1056_v26 = vmul.f32 %v1055_v20, %v1050_v24 }
 0x63c   :  { %v2767_v27 = vpop.eup %2766 }
 0x63d   :  { %v1051_v28 = vmul.f32 %v2767_v27, %v1035_v49  ;;  %v3190_v30 = vadd.f32 %v1061_v25, %v1056_v26  ;;  %v1276_v49 = vsub.s32 5, %v3049_v11 }
 0x63f   :  { %v1057_v29 = vmul.f32 %v1055_v20, %v1051_v28  ;;  %v1064_v3 = vadd.f32 %v3190_v30, %v3032_v5  ;;  %v1272_v5 = vpack.c.bf16 %v3163_v33, %v3161_v32  ;;  %v1069_v32 = vsub.s32 3, %v3049_v11 }
 0x640   :  { %v1277_v50 = vrot.slane %v3052_v13, %v1276_v49 }
 0x641   :  { %v3192_v31 = vadd.f32 %v1061_v25, %v1057_v29  ;;  %v1070_v33 = vrot.slane %v3052_v13, %v1069_v32  ;;  %v1379_v29 = vadd.s32 16, %v3049_v11 }
 0x643   :  { %v1065_v39 = vadd.f32 %v3192_v31, %v3038_v6  ;;  %v1273_v6 = vpack.c.bf16 %v3169_v35, %v3165_v22 }
 0x645   :  { %v1066_v34 = vpack.c.bf16 %v1065_v39, %v1064_v3  ;;  %v1380_v3 = vadd.s32 24, %v3049_v11  ;;  %v1385_v39 = vand.u32 1, %v1379_v29 }
 0x647   :  { %2600 = vmatmul.mubr.msk.bf16.vlgmr.msra.gmra.mxu1 %vm166_vm1, %v1066_v34  ;;  %v1392_v34 = vand.u32 1, %v1380_v3  ;;  %vm3238_vm7 = vcmp.eq.s32.totalorder %v1385_v39, %v3091_v59 }
 0x648   :  { %2615 = vmatprep.mubr.msk.bf16.mxu1 %vm166_vm1, %v1272_v5  ;;  %2612 = vmatpush3.bf16.msra.mxu1 %v2730_v37 }
 0x649   :  { %2613 = vmatprep.subr.bf16.mxu1 %v2731_v42  ;;  %vm3243_vm8 = vcmp.eq.s32.totalorder %v1392_v34, %v3091_v59 }
 0x64c   :  { %2614 = vmatpush3.bf16.msra.mxu1 %v2731_v42 }
 0x64d   :  { %2625 = vmatprep.subr.bf16.mxu1 %v2954_v0 }
 0x64f   :  { %2616 = vmatmul.mubr.msk.bf16.vlgmr.msra.gmra.mxu1 %vm166_vm1, %v1273_v6 }
 0x650   :  { %2629 = vmatprep.mubr.msk.bf16.mxu1 %vm2955_vm0, %v2954_v0 }
 0x653   :  { %v1254_v23 = vpop.trf.xlu0 }
 0x657   :  { %v1255_v4 = vpop.trf.xlu0 }
 0x658   :  { %v1270_v16 = vpack.c.bf16 %v1255_v4, %v1254_v23 }
 0x65a   :  { %1407 = vxpose.xlu1.c.b16.start.end [1/1] (short) (narrow) %v1270_v16, 32  ;;  %v1574_v38 = vrot.slane %v1270_v16, 4 }
 0x65b   :  { %v1256_v40 = vpop.trf.xlu0 }
 0x65c   :  { %1576 = vxpose.xlu0.c.b16.start.end [1/1] (short) (narrow) %v1574_v38, 32 }
 0x65f   :  { %v1257_v41 = vpop.trf.xlu0 }
 0x660   :  { %v1271_v36 = vpack.c.bf16 %v1257_v41, %v1256_v40 }
 0x662   :  { %1746 = vxpose.xlu0.c.b16.start.end [1/1] (short) (narrow) %v1271_v36, 32  ;;  %v1913_v48 = vrot.slane %v1271_v36, 4 }
 0x6bc   :  { %v1415_v43 = vpop.trf.xlu1 }
 0x6bd   :  { %2621 = vmatprep.mubr.msk.bf16.mxu0 %vm401_vm3, %v1415_v43 }
 0x6be   :  { %v1584_v7 = vpop.trf.xlu0 }
 0x6c0   :  { %v1416_v52 = vpop.trf.xlu1 }
 0x6c2   :  { %v1585_v15 = vpop.trf.xlu0 }
 0x6c6   :  { %v1754_v24 = vpop.trf.xlu0 }
 0x6ca   :  { %v1755_v25 = vpop.trf.xlu0 }
 0x707   :  { %v1120_v44 = vpop.f32.mrf.mxu1 }
 0x708   :  { %v1121_v45 = vadd.f32 %v1120_v44, %v1070_v33 }
 0x709   :  { %v2601_v22 = vpop.f32.mrf.mxu1 }
 0x70a   :  { %1127 = vxpose.xlu1.b32.start [1/2] (short) (narrow) %v1121_v45, 32 }
 0x70b   :  { %v1123_v35 = vpop.f32.mrf.mxu1 }
 0x70c   :  { %v1124_v46 = vadd.f32 %v1123_v35, %v1070_v33 }
 0x70d   :  { %v2602_v47 = vpop.f32.mrf.mxu1 }
 0x70e   :  { %1128 = vxpose.xlu1.b32.end [2/2] (short) (narrow) %v1124_v46, 32 }
 0x70f   :  { %v2617_v51 = vpop.f32.mrf.mxu1 }
 0x710   :  { %v1339_v62 = vadd.f32 %v2617_v51, %v1277_v50 }
 0x711   :  { %v1330_v53 = vpop.f32.mrf.mxu1 }
 0x712   :  { %v1331_v54 = vadd.f32 %v1330_v53, %v1277_v50 }
 0x713   :  { %v2618_v56 = vpop.f32.mrf.mxu1 }
 0x714   :  { %1345 = vxpose.xlu0.b32.start [1/4] (short) (narrow) %v1331_v54, 32  ;;  %v1342_v8 = vadd.f32 %v2618_v56, %v1277_v50 }
 0x715   :  { %v1333_v57 = vpop.f32.mrf.mxu1 }
 0x716   :  { %v1334_v58 = vadd.f32 %v1333_v57, %v1277_v50 }
 0x718   :  { %1346 = vxpose.xlu0.b32.cont [2/4] (short) (narrow) %v1334_v58, 32 }
 0x71c   :  { %1347 = vxpose.xlu0.b32.cont [3/4] (short) (narrow) %v1339_v62, 32 }
 0x720   :  { %1348 = vxpose.xlu0.b32.end [4/4] (short) (narrow) %v1342_v8, 32 }
 0x734   :  { %1915 = vxpose.xlu1.c.b16.start.end [1/1] (short) (narrow) %v1913_v48, 32 }
 0x786   :  { %v1143_v60 = vpop.trf.xlu1 }
 0x78a   :  { %v1144_v63 = vpop.trf.xlu1 }
 0x78b   :  { %v1159_v2 = vpack.c.bf16 %v1144_v63, %v1143_v60 }
 0x78d   :  { %v1593_v9 = vrot.slane %v1159_v2, 4  ;;  %2703 = vmatprep.subr.msk.bf16.mxu0 %vm405_vm2, %v1159_v2  ;;  %v1430_v13 = vsel %vm405_vm2, %v1159_v2, 0 }
 0x78e   :  { %2620 = vmatpush3.bf16.msra.mxu0 %v1430_v13  ;;  %v1145_v10 = vpop.trf.xlu1 }
 0x78f   :  { %2704 = vmatprep.subr.msk.bf16.mxu0 %vm405_vm2, %v1593_v9  ;;  %v1601_v14 = vsel %vm405_vm2, %v1593_v9, 0 }
 0x791   :  { %2622 = vmatmul.mubr.msk.bf16.vlgmr.msra.gmra.mxu0 %vm401_vm3, %v1416_v52 }
 0x792   :  { %2634 = vmatpush3.bf16.msra.mxu0 %v1601_v14  ;;  %v1146_v17 = vpop.trf.xlu1  ;;  %2635 = vmatprep.mubr.msk.bf16.mxu0 %vm401_vm3, %v1584_v7 }
 0x793   :  { %v1160_v18 = vpack.c.bf16 %v1146_v17, %v1145_v10 }
 0x795   :  { %2705 = vmatprep.subr.msk.bf16.mxu0 %vm405_vm2, %v1160_v18  ;;  %v1932_v20 = vrot.slane %v1160_v18, 4  ;;  %v1769_v21 = vsel %vm405_vm2, %v1160_v18, 0 }
 0x796   :  { %v1923_v26 = vpop.trf.xlu1 }
 0x797   :  { %v1940_v27 = vsel %vm405_vm2, %v1932_v20, 0 }
 0x799   :  { %2636 = vmatmul.mubr.msk.bf16.vlgmr.msra.gmra.mxu0 %vm401_vm3, %v1585_v15 }
 0x79a   :  { %2648 = vmatpush3.bf16.msra.mxu0 %v1769_v21  ;;  %2649 = vmatprep.mubr.msk.bf16.mxu0 %vm401_vm3, %v1754_v24  ;;  %v1924_v28 = vpop.trf.xlu1 }
 0x79b   :  { %2706 = vmatprep.subr.msk.bf16.mxu0 %vm405_vm2, %v1932_v20 }
 0x7a1   :  { %2650 = vmatmul.mubr.msk.bf16.vlgmr.msra.gmra.mxu0 %vm401_vm3, %v1755_v25 }
 0x7a2   :  { %2662 = vmatpush3.bf16.msra.mxu0 %v1940_v27  ;;  %2663 = vmatprep.mubr.msk.bf16.mxu0 %vm401_vm3, %v1923_v26 }
 0x7a3   :  { %2675 = vmatprep.subr.bf16.mxu0 %v2954_v0 }
 0x7a9   :  { %2664 = vmatmul.mubr.msk.bf16.vlgmr.msra.gmra.mxu0 %vm401_vm3, %v1924_v28 }
 0x7aa   :  { %2679 = vmatprep.mubr.msk.bf16.mxu0 %vm2955_vm0, %v2954_v0 }
 0x851   :  { %v2623_v23 = vpop.f32.mrf.mxu0 }
 0x852   :  { %v1483_v41 = vsel %vm3238_vm7, %v2623_v23, -1e+30 }
 0x853   :  { %v1466_v16 = vpop.f32.mrf.mxu0  ;;  %v1487_v59 = vsel %vm452_vm6, %v1483_v41, -inf }
 0x854   :  { %v1481_v36 = vsel %vm3094_vm4, %v1466_v16, -1e+30 }
 0x855   :  { %v2624_v40 = vpop.f32.mrf.mxu0  ;;  %v1485_v43 = vsel %vm452_vm6, %v1481_v36, -inf }
 0x856   :  { %v1484_v37 = vsel %vm3243_vm8, %v2624_v40, -1e+30 }
 0x857   :  { %v1488_v42 = vsel %vm452_vm6, %v1484_v37, -inf  ;;  %v1469_v5 = vpop.f32.mrf.mxu0 }
 0x858   :  { %v1482_v6 = vsel %vm3099_vm5, %v1469_v5, -1e+30  ;;  %v1490_v45 = vmax.f32 %v1487_v59, %v1488_v42 }
 0x859   :  { %v1486_v33 = vsel %vm452_vm6, %v1482_v6, -inf  ;;  %v2637_v44 = vpop.f32.mrf.mxu0 }
 0x85a   :  { %v1489_v22 = vmax.f32 %v1485_v43, %v1486_v33  ;;  %v3261_v47 = vsel %vm3238_vm7, %v2637_v44, -1e+30 }
 0x85b   :  { %v1637_v35 = vpop.f32.mrf.mxu0  ;;  %v1658_v58 = vsel %vm452_vm6, %v3261_v47, -inf }
 0x85c   :  { %v1491_v46 = vmax.f32 %v1489_v22, %v1490_v45  ;;  %v3265_v51 = vsel %vm3094_vm4, %v1637_v35, -1e+30 }
 0x85d   :  { %v2638_v48 = vpop.f32.mrf.mxu0  ;;  %v1656_v60 = vsel %vm452_vm6, %v3265_v51, -inf }
 0x85e   :  { %v1492_v50 = vrot.slane %v1491_v46, 4  ;;  %v3269_v52 = vsel %vm3243_vm8, %v2638_v48, -1e+30 }
 0x85f   :  { %v1659_v53 = vsel %vm452_vm6, %v3269_v52, -inf  ;;  %v1640_v54 = vpop.f32.mrf.mxu0 }
 0x860   :  { %v1493_v56 = vmax.f32 %v1491_v46, %v1492_v50  ;;  %v3275_v57 = vsel %vm3099_vm5, %v1640_v54, -1e+30  ;;  %v1661_v7 = vmax.f32 %v1658_v58, %v1659_v53 }
 0x861   :  { %v1657_v62 = vsel %vm452_vm6, %v3275_v57, -inf  ;;  %v2651_v63 = vpop.f32.mrf.mxu0 }
 0x862   :  { %v1494_v2 = vrot.slane %v1493_v56, 2  ;;  %v1660_v8 = vmax.f32 %v1656_v60, %v1657_v62  ;;  %v3285_v14 = vsel %vm3238_vm7, %v2651_v63, -1e+30 }
 0x863   :  { %v1805_v9 = vpop.f32.mrf.mxu0  ;;  %v1826_v29 = vsel %vm452_vm6, %v3285_v14, -inf }
 0x864   :  { %v1495_v13 = vmax.f32 %v1493_v56, %v1494_v2  ;;  %v1662_v10 = vmax.f32 %v1660_v8, %v1661_v7  ;;  %v3289_v20 = vsel %vm3094_vm4, %v1805_v9, -1e+30 }
 0x865   :  { %v2652_v15 = vpop.f32.mrf.mxu0  ;;  %v1824_v3 = vsel %vm452_vm6, %v3289_v20, -inf }
 0x866   :  { %v1496_v17 = vrot.slane %v1495_v13, 1  ;;  %v1663_v18 = vrot.slane %v1662_v10, 4  ;;  %v3293_v21 = vsel %vm3243_vm8, %v2652_v15, -1e+30 }
 0x867   :  { %v1808_v24 = vpop.f32.mrf.mxu0  ;;  %v1827_v27 = vsel %vm452_vm6, %v3293_v21, -inf }
 0x868   :  { %v1497_v25 = vmax.f32 %v1495_v13, %v1496_v17  ;;  %v1664_v26 = vmax.f32 %v1662_v10, %v1663_v18  ;;  %v3299_v28 = vsel %vm3099_vm5, %v1808_v24, -1e+30  ;;  %v1829_v59 = vmax.f32 %v1826_v29, %v1827_v27 }
 0x869   :  { %v1825_v39 = vsel %vm452_vm6, %v3299_v28, -inf  ;;  %v2665_v34 = vpop.f32.mrf.mxu0 }
 0x86a   :  { %v1498_v23 = vsub.f32 %v1481_v36, %v1497_v25  ;;  %v1499_v16 = vsub.f32 %v1482_v6, %v1497_v25  ;;  %v1500_v40 = vsub.f32 %v1483_v41, %v1497_v25  ;;  %v1501_v42 = vsub.f32 %v1484_v37, %v1497_v25 }
 0x86b   :  { %v1665_v5 = vrot.slane %v1664_v26, 2  ;;  %v1828_v43 = vmax.f32 %v1824_v3, %v1825_v39  ;;  %v1976_v33 = vpop.f32.mrf.mxu0  ;;  %v3309_v53 = vsel %vm3238_vm7, %v2665_v34, -1e+30 }
 0x86c   :  { %v1502_v44 = vmul.f32 1.442695, %v1498_v23  ;;  %v1504_v45 = vmul.f32 1.442695, %v1499_v16  ;;  %v1506_v22 = vmul.f32 1.442695, %v1500_v40 }
 0x86d   :  { %v1508_v35 = vmul.f32 1.442695, %v1501_v42  ;;  %v1666_v46 = vmax.f32 %v1664_v26, %v1665_v5  ;;  %v1830_v48 = vmax.f32 %v1828_v43, %v1829_v59  ;;  %v2666_v50 = vpop.f32.mrf.mxu0  ;;  %v3317_v6 = vsel %vm3094_vm4, %v1976_v33, -1e+30 }
 0x86e   :  { %2768 = vpow2.f32 %v1502_v44  ;;  %v3313_v41 = vsel %vm3243_vm8, %v2666_v50, -1e+30  ;;  %v1997_v60 = vsel %vm452_vm6, %v3309_v53, -inf  ;;  %v1995_v61 = vsel %vm452_vm6, %v3317_v6, -inf }
 0x86f   :  { %2770 = vpow2.f32 %v1504_v45  ;;  %v1667_v36 = vrot.slane %v1666_v46, 1  ;;  %v1831_v37 = vrot.slane %v1830_v48, 4  ;;  %v1979_v54 = vpop.f32.mrf.mxu0  ;;  %v1998_v38 = vsel %vm452_vm6, %v3313_v41, -inf }
 0x870   :  { %2772 = vpow2.f32 %v1506_v22  ;;  %v3321_v56 = vsel %vm3099_vm5, %v1979_v54, -1e+30  ;;  %v2000_v9 = vmax.f32 %v1997_v60, %v1998_v38 }
 0x871   :  { %2774 = vpow2.f32 %v1508_v35  ;;  %v1668_v4 = vmax.f32 %v1666_v46, %v1667_v36  ;;  %v1832_v58 = vmax.f32 %v1830_v48, %v1831_v37  ;;  %v1996_v62 = vsel %vm452_vm6, %v3321_v56, -inf }
 0x872   :  { %v1999_v13 = vmax.f32 %v1995_v61, %v1996_v62 }
 0x873   :  { %v1669_v63 = vsub.f32 %v3265_v51, %v1668_v4  ;;  %v1670_v1 = vsub.f32 %v3275_v57, %v1668_v4  ;;  %v1671_v2 = vsub.f32 %v3261_v47, %v1668_v4  ;;  %v1672_v7 = vsub.f32 %v3269_v52, %v1668_v4 }
 0x874   :  { %v1833_v8 = vrot.slane %v1832_v58, 2  ;;  %v2001_v25 = vmax.f32 %v1999_v13, %v2000_v9 }
 0x875   :  { %v1673_v10 = vmul.f32 1.442695, %v1669_v63  ;;  %v1675_v15 = vmul.f32 1.442695, %v1670_v1  ;;  %v1677_v17 = vmul.f32 1.442695, %v1671_v2 }
 0x876   :  { %v1679_v18 = vmul.f32 1.442695, %v1672_v7  ;;  %v1834_v24 = vmax.f32 %v1832_v58, %v1833_v8  ;;  %v2002_v27 = vrot.slane %v2001_v25, 4 }
 0x877   :  { %2776 = vpow2.f32 %v1673_v10 }
 0x878   :  { %2778 = vpow2.f32 %v1675_v15  ;;  %v1835_v26 = vrot.slane %v1834_v24, 1  ;;  %v2003_v57 = vmax.f32 %v2001_v25, %v2002_v27 }
 0x879   :  { %2780 = vpow2.f32 %v1677_v17 }
 0x87a   :  { %2782 = vpow2.f32 %v1679_v18  ;;  %v1836_v51 = vmax.f32 %v1834_v24, %v1835_v26  ;;  %v2004_v42 = vrot.slane %v2003_v57, 2 }
 0x87b   :  { %v3335_v47 = vpop.eup %2768 }
 0x87c   :  { %v3337_v52 = vpop.eup %2770  ;;  %v1510_v29 = vsel %vm452_vm6, %v3335_v47, 0.0  ;;  %v1837_v3 = vsub.f32 %v3289_v20, %v1836_v51  ;;  %v1838_v39 = vsub.f32 %v3299_v28, %v1836_v51  ;;  %v1839_v34 = vsub.f32 %v3285_v14, %v1836_v51 }
 0x87d   :  { %v3344_v23 = vpop.eup %2772  ;;  %v1511_v16 = vsel %vm452_vm6, %v3337_v52, 0.0  ;;  %v1840_v40 = vsub.f32 %v3293_v21, %v1836_v51  ;;  %v2005_v45 = vmax.f32 %v2003_v57, %v2004_v42 }
 0x87e   :  { %v3349_v5 = vpop.eup %2774  ;;  %v1512_v59 = vadd.f32 %v1511_v16, %v1510_v29  ;;  %v1841_v43 = vmul.f32 1.442695, %v1837_v3  ;;  %v1843_v33 = vmul.f32 1.442695, %v1838_v39  ;;  %v1513_v20 = vsel %vm452_vm6, %v3344_v23, 0.0 }
 0x87f   :  { %v1845_v44 = vmul.f32 1.442695, %v1839_v34  ;;  %v1847_v28 = vmul.f32 1.442695, %v1840_v40  ;;  %v1515_v22 = vsel %vm452_vm6, %v3349_v5, 0.0  ;;  %v2006_v35 = vrot.slane %v2005_v45, 1 }
 0x880   :  { %v1514_v14 = vadd.f32 %v1513_v20, %v1512_v59  ;;  %2784 = vpow2.f32 %v1841_v43 }
 0x881   :  { %2786 = vpow2.f32 %v1843_v33  ;;  %v2007_v46 = vmax.f32 %v2005_v45, %v2006_v35 }
 0x882   :  { %v1516_v21 = vadd.f32 %v1515_v22, %v1514_v14  ;;  %2788 = vpow2.f32 %v1845_v44 }
 0x883   :  { %2790 = vpow2.f32 %v1847_v28  ;;  %v2008_v54 = vsub.f32 %v3317_v6, %v2007_v46  ;;  %v2009_v4 = vsub.f32 %v3321_v56, %v2007_v46  ;;  %v2010_v58 = vsub.f32 %v3309_v53, %v2007_v46 }
 0x884   :  { %v3355_v48 = vpop.eup %2776  ;;  %v1517_v50 = vrot.slane %v1516_v21, 4  ;;  %v2011_v62 = vsub.f32 %v3313_v41, %v2007_v46 }
 0x885   :  { %v3357_v36 = vpop.eup %2778  ;;  %v1681_v37 = vsel %vm452_vm6, %v3355_v48, 0.0  ;;  %v2012_v2 = vmul.f32 1.442695, %v2008_v54  ;;  %v2014_v7 = vmul.f32 1.442695, %v2009_v4 }
 0x886   :  { %v3364_v38 = vpop.eup %2780  ;;  %v1518_v60 = vadd.f32 %v1517_v50, %v1516_v21  ;;  %v1682_v61 = vsel %vm452_vm6, %v3357_v36, 0.0  ;;  %v2016_v56 = vmul.f32 1.442695, %v2010_v58  ;;  %v2018_v9 = vmul.f32 1.442695, %v2011_v62 }
 0x887   :  { %v3369_v63 = vpop.eup %2782  ;;  %v1683_v1 = vadd.f32 %v1682_v61, %v1681_v37  ;;  %v1684_v6 = vsel %vm452_vm6, %v3364_v38, 0.0  ;;  %2792 = vpow2.f32 %v2012_v2 }
 0x888   :  { %v1519_v8 = vrot.slane %v1518_v60, 2  ;;  %v1686_v10 = vsel %vm452_vm6, %v3369_v63, 0.0  ;;  %2794 = vpow2.f32 %v2014_v7  ;;  %v1361_v7 = vpop.trf.xlu0 }
 0x889   :  { %v1685_v53 = vadd.f32 %v1684_v6, %v1683_v1  ;;  %2796 = vpow2.f32 %v2016_v56 }
 0x88a   :  { %v1520_v13 = vadd.f32 %v1519_v8, %v1518_v60  ;;  %2798 = vpow2.f32 %v2018_v9 }
 0x88b   :  { %v1687_v15 = vadd.f32 %v1686_v10, %v1685_v53 }
 0x88c   :  { %v1521_v41 = vrot.slane %v1520_v13, 1 }
 0x88d   :  { %v3375_v17 = vpop.eup %2784  ;;  %v1688_v18 = vrot.slane %v1687_v15, 4 }
 0x88e   :  { %v3377_v24 = vpop.eup %2786  ;;  %v1522_v25 = vadd.f32 %v1521_v41, %v1520_v13  ;;  %v1849_v26 = vsel %vm452_vm6, %v3375_v17, 0.0  ;;  %v1362_v41 = vpop.trf.xlu0 }
 0x88f   :  { %v3381_v27 = vpop.eup %2788  ;;  %v1689_v51 = vadd.f32 %v1688_v18, %v1687_v15  ;;  %v1850_v57 = vsel %vm452_vm6, %v3377_v24, 0.0 }
 0x890   :  { %v3385_v29 = vpop.eup %2790  ;;  %2800 = vrcp.f32 %v1522_v25  ;;  %v1851_v3 = vadd.f32 %v1850_v57, %v1849_v26  ;;  %v1852_v34 = vsel %vm452_vm6, %v3381_v27, 0.0  ;;  %v1377_v25 = vpack.c.bf16 %v1362_v41, %v1361_v7 }
 0x891   :  { %v1690_v39 = vrot.slane %v1689_v51, 2  ;;  %v1854_v42 = vsel %vm452_vm6, %v3385_v29, 0.0 }
 0x892   :  { %v1853_v16 = vadd.f32 %v1852_v34, %v1851_v3 }
 0x893   :  { %v1691_v40 = vadd.f32 %v1690_v39, %v1689_v51 }
 0x894   :  { %v1855_v59 = vadd.f32 %v1854_v42, %v1853_v16  ;;  %v3391_v33 = vpop.eup %2792 }
 0x895   :  { %v1692_v43 = vrot.slane %v1691_v40, 1  ;;  %v3393_v44 = vpop.eup %2794  ;;  %v2020_v45 = vsel %vm452_vm6, %v3391_v33, 0.0 }
 0x896   :  { %v1856_v20 = vrot.slane %v1855_v59, 4  ;;  %v3397_v14 = vpop.eup %2796  ;;  %v2021_v35 = vsel %vm452_vm6, %v3393_v44, 0.0 }
 0x897   :  { %v1693_v28 = vadd.f32 %v1692_v43, %v1691_v40  ;;  %v3401_v21 = vpop.eup %2798  ;;  %v2022_v46 = vadd.f32 %v2021_v35, %v2020_v45  ;;  %v2023_v37 = vsel %vm452_vm6, %v3397_v14, 0.0 }
 0x898   :  { %v1857_v22 = vadd.f32 %v1856_v20, %v1855_v59  ;;  %v2025_v58 = vsel %vm452_vm6, %v3401_v21, 0.0 }
 0x899   :  { %2802 = vrcp.f32 %v1693_v28  ;;  %v2024_v54 = vadd.f32 %v2023_v37, %v2022_v46 }
 0x89a   :  { %v1858_v50 = vrot.slane %v1857_v22, 2 }
 0x89b   :  { %v2026_v61 = vadd.f32 %v2025_v58, %v2024_v54 }
 0x89c   :  { %v1859_v4 = vadd.f32 %v1858_v50, %v1857_v22 }
 0x89d   :  { %v2801_v60 = vpop.eup %2800  ;;  %v2027_v8 = vrot.slane %v2026_v61, 4 }
 0x89e   :  { %v1860_v62 = vrot.slane %v1859_v4, 1  ;;  %v1526_v1 = vmul.f32 %v2801_v60, %v3344_v23  ;;  %v1527_v2 = vmul.f32 %v2801_v60, %v3349_v5  ;;  %v1524_v9 = vmul.f32 %v2801_v60, %v3335_v47 }
 0x89f   :  { %v1525_v53 = vmul.f32 %v2801_v60, %v3337_v52  ;;  %v2028_v13 = vadd.f32 %v2027_v8, %v2026_v61 }
 0x8a0   :  { %v1861_v6 = vadd.f32 %v1860_v62, %v1859_v4  ;;  %v1529_v56 = vpack.c.bf16 %v1527_v2, %v1526_v1 }
 0x8a1   :  { %v2029_v10 = vrot.slane %v2028_v13, 2  ;;  %v1528_v15 = vpack.c.bf16 %v1525_v53, %v1524_v9 }
 0x8a2   :  { %2804 = vrcp.f32 %v1861_v6  ;;  %2626 = vmatpush3.bf16.msra.mxu1 %v1529_v56 }
 0x8a3   :  { %2627 = vmatprep.subr.bf16.mxu1 %v2954_v0  ;;  %v2030_v18 = vadd.f32 %v2029_v10, %v2028_v13  ;;  %v2089_v13 = vsub.s32 6, %v3049_v11  ;;  %v3449_v10 = vld [vmem:[#allocation10] sm:$0xff] }
 0x8a5   :  { %v2031_v5 = vrot.slane %v2030_v18, 1 }
 0x8a6   :  { %v2803_v23 = vpop.eup %2802  ;;  %2628 = vmatpush3.bf16.msra.mxu1 %v1528_v15  ;;  %v2090_v15 = vrot.slane %v3449_v10, %v2089_v13 }
 0x8a7   :  { %2639 = vmatprep.subr.bf16.mxu1 %v2954_v0  ;;  %v1697_v26 = vmul.f32 %v2803_v23, %v3364_v38  ;;  %v1698_v47 = vmul.f32 %v2803_v23, %v3369_v63  ;;  %v2032_v52 = vadd.f32 %v2031_v5, %v2030_v18  ;;  %v1695_v57 = vmul.f32 %v2803_v23, %v3355_v48  ;;  %v1363_v48 = vpop.trf.xlu0 }
 0x8a8   :  { %v1696_v3 = vmul.f32 %v2803_v23, %v3357_v36  ;;  %v1702_v38 = vrot.slane %v1377_v25, 4 }
 0x8a9   :  { %2630 = vmatmul.mubr.msk.bf16.vlgmr.msra.gmra.mxu1 %vm166_vm1, %v1377_v25  ;;  %v1700_v51 = vpack.c.bf16 %v1698_v47, %v1697_v26  ;;  %2806 = vrcp.f32 %v2032_v52 }
 0x8aa   :  { %2643 = vmatprep.mubr.msk.bf16.mxu1 %vm2955_vm0, %v2954_v0  ;;  %v1699_v39 = vpack.c.bf16 %v1696_v3, %v1695_v57 }
 0x8ab   :  { %2640 = vmatpush3.bf16.msra.mxu1 %v1700_v51  ;;  %v1364_v43 = vpop.trf.xlu0 }
 0x8ac   :  { %2641 = vmatprep.subr.bf16.mxu1 %v2954_v0 }
 0x8af   :  { %v2805_v34 = vpop.eup %2804  ;;  %2642 = vmatpush3.bf16.msra.mxu1 %v1699_v39 }
 0x8b0   :  { %2653 = vmatprep.subr.bf16.mxu1 %v2954_v0  ;;  %v1865_v63 = vmul.f32 %v2805_v34, %v3381_v27  ;;  %v1866_v16 = vmul.f32 %v2805_v34, %v3385_v29  ;;  %v1863_v40 = vmul.f32 %v2805_v34, %v3375_v17  ;;  %v1864_v42 = vmul.f32 %v2805_v34, %v3377_v24 }
 0x8b1   :  { %v1378_v27 = vpack.c.bf16 %v1364_v43, %v1363_v48 }
 0x8b2   :  { %2644 = vmatmul.mubr.msk.bf16.vlgmr.msra.gmra.mxu1 %vm166_vm1, %v1702_v38  ;;  %v1868_v36 = vpack.c.bf16 %v1866_v16, %v1865_v63  ;;  %v1867_v59 = vpack.c.bf16 %v1864_v42, %v1863_v40  ;;  %v2734_v42 = vld [vmem:[#allocation8 + $0x78] sm:$0xff]  }
 0x8b3   :  { %2657 = vmatprep.mubr.msk.bf16.mxu1 %vm2955_vm0, %v2954_v0  ;;  %v2041_v35 = vrot.slane %v1378_v27, 4 }
 0x8b4   :  { %2654 = vmatpush3.bf16.msra.mxu1 %v1868_v36 }
 0x8b5   :  { %2655 = vmatprep.subr.bf16.mxu1 %v2954_v0 }
 0x8b6   :  { %v2807_v20 = vpop.eup %2806 }
 0x8b7   :  { %v2036_v29 = vmul.f32 %v2807_v20, %v3397_v14  ;;  %v2037_v28 = vmul.f32 %v2807_v20, %v3401_v21  ;;  %v2034_v24 = vmul.f32 %v2807_v20, %v3391_v33  ;;  %v2035_v45 = vmul.f32 %v2807_v20, %v3393_v44  ;;  %v2732_v14 = vld [vmem:[#allocation8 + $0x68] sm:$0xff]   ;;  %v2733_v33 = vld [vmem:[#allocation8 + $0x60] sm:$0xff]  }
 0x8b8   :  { %2656 = vmatpush3.bf16.msra.mxu1 %v1867_v59  ;;  %2676 = vmatpush3.bf16.msra.mxu0 %v2732_v14  ;;  %v2736_v59 = vld [vmem:[#allocation8 + $0x98] sm:$0xff]   ;;  %v2200_v14 = vrot.slane %v3182_v19, %v1169_v55  ;;  %v2206_v55 = vsub.s32 7, %v3049_v11 }
 0x8b9   :  { %2667 = vmatprep.subr.bf16.mxu1 %v2954_v0  ;;  %v2039_v17 = vpack.c.bf16 %v2037_v28, %v2036_v29  ;;  %v2038_v22 = vpack.c.bf16 %v2035_v45, %v2034_v24  ;;  %2677 = vmatprep.subr.bf16.mxu0 %v2954_v0  ;;  %v2194_v45 = vrot.slane %v3182_v19, %v1069_v32  ;;  %v2739_v32 = vld [vmem:[#allocation8 + $0x80] sm:$0xff]  }
 0x8bb   :  { %2658 = vmatmul.mubr.msk.bf16.vlgmr.msra.gmra.mxu1 %vm166_vm1, %v1378_v27 }
 0x8bc   :  { %2671 = vmatprep.mubr.msk.bf16.mxu1 %vm2955_vm0, %v2954_v0  ;;  %2668 = vmatpush3.bf16.msra.mxu1 %v2039_v17 }
 0x8bd   :  { %2669 = vmatprep.subr.bf16.mxu1 %v2954_v0  ;;  %2678 = vmatpush3.bf16.msra.mxu0 %v2733_v33 }
 0x8be   :  { %2691 = vmatprep.subr.bf16.mxu0 %v2954_v0 }
 0x8c0   :  { %2670 = vmatpush3.bf16.msra.mxu1 %v2038_v22 }
 0x8c1   :  { %2683 = vmatprep.subr.bf16.mxu1 %v2954_v0 }
 0x8c3   :  { %2672 = vmatmul.mubr.msk.bf16.vlgmr.msra.gmra.mxu1 %vm166_vm1, %v2041_v35 }
 0x8c4   :  { %2687 = vmatprep.mubr.msk.bf16.mxu1 %vm2955_vm0, %v2954_v0  ;;  %2684 = vmatpush3.bf16.msra.mxu1 %v2734_v42 }
 0x8c5   :  { %2685 = vmatprep.subr.bf16.mxu1 %v2954_v0 }
 0x969   :  { %v1567_v44 = vpop.f32.mrf.mxu1 }
 0x96b   :  { %v2631_v21 = vpop.f32.mrf.mxu1 }
 0x96d   :  { %v1570_v46 = vpop.f32.mrf.mxu1 }
 0x96f   :  { %v2632_v50 = vpop.f32.mrf.mxu1 }
 0x972   :  { %v1740_v37 = vpop.f32.mrf.mxu1 }
 0x973   :  { %v2085_v54 = vpack.c.bf16 %v1740_v37, %v1567_v44 }
 0x974   :  { %v2645_v4 = vpop.f32.mrf.mxu1 }
 0x975   :  { %2091 = vxpose.xlu1.c.b16.start [1/2] (short) (narrow) %v2085_v54, 16  ;;  %v2737_v54 = vld [vmem:[#allocation8 + $0x90] sm:$0xff]   ;;  %v2738_v4 = vld [vmem:[#allocation8 + $0x88] sm:$0xff]  }
 0x976   :  { %v1743_v58 = vpop.f32.mrf.mxu1 }
 0x977   :  { %v2207_v58 = vrot.slane %v3449_v10, %v2206_v55 }
 0x978   :  { %v2646_v60 = vpop.f32.mrf.mxu1 }
 0x97b   :  { %v1906_v61 = vpop.f32.mrf.mxu1 }
 0x97d   :  { %v2659_v62 = vpop.f32.mrf.mxu1 }
 0x97f   :  { %v1909_v1 = vpop.f32.mrf.mxu1 }
 0x981   :  { %v2660_v2 = vpop.f32.mrf.mxu1 }
 0x983   :  { %v2079_v7 = vpop.f32.mrf.mxu1 }
 0x984   :  { %v2086_v8 = vpack.c.bf16 %v2079_v7, %v1906_v61 }
 0x985   :  { %v2673_v6 = vpop.f32.mrf.mxu1 }
 0x986   :  { %2092 = vxpose.xlu1.c.b16.end [2/2] (short) (narrow) %v2086_v8, 16 }
 0x987   :  { %v2082_v56 = vpop.f32.mrf.mxu1 }
 0x989   :  { %v2674_v9 = vpop.f32.mrf.mxu1 }
 0x9e4   :  { %v2099_v53 = vpop.trf.xlu1 }
 0x9e5   :  { %2680 = vmatmul.mubr.msk.bf16.vlgmr.msra.gmra.mxu0 %vm166_vm1, %v2099_v53 }
 0x9e6   :  { %2699 = vmatprep.mubr.msk.bf16.mxu0 %vm2955_vm0, %v2954_v0  ;;  %2692 = vmatpush3.bf16.msra.mxu0 %v2736_v59 }
 0x9e7   :  { %2693 = vmatprep.subr.bf16.mxu0 %v2954_v0 }
 0x9ea   :  { %2694 = vmatpush3.bf16.msra.mxu0 %v2737_v54 }
 0x9eb   :  { %2695 = vmatprep.subr.bf16.mxu0 %v2954_v0 }
 0x9ee   :  { %2696 = vmatpush3.bf16.msra.mxu0 %v2738_v4 }
 0x9ef   :  { %2697 = vmatprep.subr.bf16.mxu0 %v2954_v0  ;;  %v2270_v0 = vrot.slane %v3182_v19, %v152_v12 }
 0x9f2   :  { %2698 = vmatpush3.bf16.msra.mxu0 %v2739_v32 }
 0xaa5   :  { %v2156_v41 = vpop.f32.mrf.mxu0 }
 0xaa6   :  { %v2157_v18 = vadd.f32 %v2156_v41, %v2090_v15 }
 0xaa7   :  { %v2681_v23 = vpop.f32.mrf.mxu0 }
 0xaa8   :  { %v2163_v5 = vadd.f32 %v2157_v18, %v3190_v30 }
 0xaa9   :  { %v2159_v25 = vpop.f32.mrf.mxu0 }
 0xaaa   :  { %v2160_v26 = vadd.f32 %v2159_v25, %v2090_v15  ;;  %v2165_v47 = vsel %vm166_vm1, %v2163_v5, 0.0 }
 0xaab   :  { %2166 = vadd.xlane.f32.xlu1 %v2165_v47  ;;  %v2682_v52 = vpop.f32.mrf.mxu0 }
 0xaac   :  { %v2164_v51 = vadd.f32 %v2160_v26, %v3192_v31  ;;  %v2735_v31 = vld [vmem:[#allocation8 + $0x70] sm:$0xff]  }
 0xaad   :  { %2686 = vmatpush3.bf16.msra.mxu1 %v2735_v31  ;;  %v2371_v31 = vrot.slane %v3182_v19, %v1276_v49 }
 0xaae   :  { %v2168_v57 = vsel %vm166_vm1, %v2164_v51, 0.0 }
 0xaaf   :  { %2169 = vadd.xlane.f32.xlu0 %v2168_v57 }
 0xb34   :  { %v2167_v3 = vpop.xlane.xlu1 %2166 }
 0xb35   :  { %v2171_v39 = vmul.f32 0.03125, %v2167_v3 }
 0xb37   :  { %v2173_v34 = vsub.f32 %v2163_v5, %v2171_v39 }
 0xb38   :  { %v2170_v38 = vpop.xlane.xlu0 %2169 }
 0xb39   :  { %v2172_v63 = vmul.f32 0.03125, %v2170_v38  ;;  %v2175_v16 = vmul.f32 %v2173_v34, %v2173_v34 }
 0xb3b   :  { %v2174_v48 = vsub.f32 %v2164_v51, %v2172_v63  ;;  %v2177_v30 = vsel %vm166_vm1, %v2175_v16, 0.0 }
 0xb3c   :  { %2178 = vadd.xlane.f32.xlu1 %v2177_v30 }
 0xb3d   :  { %v2176_v36 = vmul.f32 %v2174_v48, %v2174_v48 }
 0xb3f   :  { %v2180_v40 = vsel %vm166_vm1, %v2176_v36, 0.0 }
 0xb40   :  { %2181 = vadd.xlane.f32.xlu1 %v2180_v40 }
 0xbc5   :  { %v2179_v43 = vpop.xlane.xlu1 %2178 }
 0xbc6   :  { %v2183_v20 = vmul.f32 0.03125, %v2179_v43  ;;  %v2377_v43 = vrot.slane %v3182_v19, %v2089_v13 }
 0xbc8   :  { %v2185_v27 = vadd.f32 1e-05, %v2183_v20 }
 0xbc9   :  { %v2182_v29 = vpop.xlane.xlu1 %2181 }
 0xbca   :  { %2808 = vrsqrt.f32 %v2185_v27  ;;  %v2184_v28 = vmul.f32 0.03125, %v2182_v29 }
 0xbcc   :  { %v2186_v17 = vadd.f32 1e-05, %v2184_v28 }
 0xbce   :  { %2810 = vrsqrt.f32 %v2186_v17 }
 0xbd7   :  { %v2809_v24 = vpop.eup %2808 }
 0xbd8   :  { %v2189_v22 = vmul.f32 %v2809_v24, %v2173_v34 }
 0xbda   :  { %v2195_v44 = vmul.f32 %v2194_v45, %v2189_v22 }
 0xbdb   :  { %v2811_v35 = vpop.eup %2810 }
 0xbdc   :  { %v2190_v33 = vmul.f32 %v2811_v35, %v2174_v48  ;;  %v2201_v46 = vadd.f32 %v2200_v14, %v2195_v44 }
 0xbde   :  { %v2196_v21 = vmul.f32 %v2194_v45, %v2190_v33 }
 0xbe0   :  { %v2202_v50 = vadd.f32 %v2200_v14, %v2196_v21 }
 0xbe2   :  { %v2203_v37 = vpack.c.bf16 %v2202_v50, %v2201_v46 }
 0xbe4   :  { %2688 = vmatmul.mubr.msk.bf16.vlgmr.msra.gmra.mxu1 %vm166_vm1, %v2203_v37 }
 0xca4   :  { %v2257_v60 = vpop.f32.mrf.mxu1 }
 0xca5   :  { %v2258_v62 = vadd.f32 %v2257_v60, %v2207_v58 }
 0xca6   :  { %v2689_v61 = vpop.f32.mrf.mxu1 }
 0xca7   :  { %v2264_v8 = vmax.f32 %v2258_v62, 0.0 }
 0xca8   :  { %v2260_v1 = vpop.f32.mrf.mxu1 }
 0xca9   :  { %v2261_v2 = vadd.f32 %v2260_v1, %v2207_v58 }
 0xcaa   :  { %v2690_v7 = vpop.f32.mrf.mxu1 }
 0xcab   :  { %v2265_v6 = vmax.f32 %v2261_v2, 0.0 }
 0xcad   :  { %v2266_v56 = vpack.c.bf16 %v2265_v6, %v2264_v8 }
 0xcaf   :  { %2700 = vmatmul.mubr.msk.bf16.vlgmr.msra.gmra.mxu0 %vm2295_vm9, %v2266_v56 }
 0xd6f   :  { %v2333_v9 = vpop.f32.mrf.mxu0 }
 0xd70   :  { %v2334_v53 = vadd.f32 %v2333_v9, %v2270_v0 }
 0xd71   :  { %v2701_v15 = vpop.f32.mrf.mxu0 }
 0xd72   :  { %v2340_v41 = vadd.f32 %v2334_v53, %v2201_v46 }
 0xd73   :  { %v2336_v10 = vpop.f32.mrf.mxu0 }
 0xd74   :  { %v2337_v18 = vadd.f32 %v2336_v10, %v2270_v0  ;;  %v2342_v23 = vsel %vm166_vm1, %v2340_v41, 0.0 }
 0xd75   :  { %2343 = vadd.xlane.f32.xlu1 %v2342_v23  ;;  %v2702_v5 = vpop.f32.mrf.mxu0 }
 0xd76   :  { %v2341_v25 = vadd.f32 %v2337_v18, %v2202_v50 }
 0xd78   :  { %v2345_v26 = vsel %vm166_vm1, %v2341_v25, 0.0 }
 0xd79   :  { %2346 = vadd.xlane.f32.xlu1 %v2345_v26 }
 0xdfe   :  { %v2344_v47 = vpop.xlane.xlu1 %2343 }
 0xdff   :  { %v2348_v52 = vmul.f32 0.03125, %v2344_v47 }
 0xe01   :  { %v2350_v51 = vsub.f32 %v2340_v41, %v2348_v52 }
 0xe02   :  { %v2347_v57 = vpop.xlane.xlu1 %2346 }
 0xe03   :  { %v2349_v3 = vmul.f32 0.03125, %v2347_v57  ;;  %v2352_v12 = vmul.f32 %v2350_v51, %v2350_v51 }
 0xe05   :  { %v2351_v39 = vsub.f32 %v2341_v25, %v2349_v3  ;;  %v2354_v34 = vsel %vm166_vm1, %v2352_v12, 0.0 }
 0xe06   :  { %2355 = vadd.xlane.f32.xlu1 %v2354_v34 }
 0xe07   :  { %v2353_v38 = vmul.f32 %v2351_v39, %v2351_v39 }
 0xe09   :  { %v2357_v63 = vsel %vm166_vm1, %v2353_v38, 0.0 }
 0xe0a   :  { %2358 = vadd.xlane.f32.xlu1 %v2357_v63 }
 0xe8f   :  { %v2356_v16 = vpop.xlane.xlu1 %2355 }
 0xe90   :  { %v2360_v48 = vmul.f32 0.03125, %v2356_v16 }
 0xe92   :  { %v2362_v30 = vadd.f32 1e-05, %v2360_v48 }
 0xe93   :  { %v2359_v36 = vpop.xlane.xlu1 %2358 }
 0xe94   :  { %2812 = vrsqrt.f32 %v2362_v30  ;;  %v2361_v40 = vmul.f32 0.03125, %v2359_v36 }
 0xe96   :  { %v2363_v42 = vadd.f32 1e-05, %v2361_v40 }
 0xe98   :  { %2814 = vrsqrt.f32 %v2363_v42 }
 0xea1   :  { %v2813_v59 = vpop.eup %2812 }
 0xea2   :  { %v2366_v20 = vmul.f32 %v2813_v59, %v2350_v51 }
 0xea4   :  { %v2372_v27 = vmul.f32 %v2371_v31, %v2366_v20 }
 0xea5   :  { %v2815_v29 = vpop.eup %2814 }
 0xea6   :  { %v2367_v28 = vmul.f32 %v2815_v29, %v2351_v39  ;;  %v2378_v17 = vadd.f32 %v2377_v43, %v2372_v27 }
 0xea8   :  { %v2373_v24 = vmul.f32 %v2371_v31, %v2367_v28  ;;  %2380 = vst.msk [vmem:[#allocation11] sm:$0xff] %vm166_vm1, %v2378_v17 }
 0xeaa   :  { %v2379_v45 = vadd.f32 %v2377_v43, %v2373_v24 }
 0xeac   :  { %2381 = vst.msk [vmem:[#allocation11 + $0x8] sm:$0xff] %vm166_vm1, %v2379_v45 }
 0xead   :  { %2928 = shalt.err (!%p2925_p1)
}
 0xeae   :  { %2393 = dma.vmem_to_hbm [thread:$0]  %s2388_s25, 256, %s3500_s6, [#allocation4], %s2947_s26, %s2947_s26, %s2948_s27  }
 0xeaf   :  { %2943 = dma.done.wait [#allocation4], 256  }
 0xeb0   :  { %2944 = vsyncadd [#allocation4], 4294967040 }
 0xeb1   :  { %2397 = vsyncpa [#allocation3], 1 }
 0xeb2   :  { %2398 = vsyncpa [#allocation6], 1 }
 0xeb3   :  { %2399 = vsyncpa [#allocation9], 1 }
 0xeb4   :  { %2400 = vsyncpa [#allocation4], 1 }

</bundles_post_ra>
